<compile_context>
chip_gen: v7x
topology: tpu7x:2x2x1
jax: 0.10.0
libtpu: 0.0.40
codegen_flags: <defaults>
</compile_context>

<pallas_src>
import jax
import jax.numpy as jnp
from jax.experimental import pallas as pl
from jax.experimental.pallas import tpu as pltpu

# ----------------------------- hyper-parameters -----------------------------
N_NODES = 16
WINDOW = 4                      # window_size (number of dynamic time steps)
ENTITY_DIM = 8
STATIC_SPARSE_DIMS = (5, 7)     # vocab sizes of static categorical features
STATIC_DENSE_DIM = 6
DYNAMIC_SPARSE_DIMS = (6, 9)
DYNAMIC_DENSE_DIM = 5
N_EDGES = 32

STATIC_IN = len(STATIC_SPARSE_DIMS) * ENTITY_DIM + STATIC_DENSE_DIM      # 22
DYN_IN = len(DYNAMIC_SPARSE_DIMS) * ENTITY_DIM + DYNAMIC_DENSE_DIM       # 21

RNN_IN = 24
RNN_HIDDEN = 32
GNN_LAYERS = (DYN_IN, 32, RNN_IN)          # GNN layer widths
STATIC_LAYERS = (STATIC_IN, RNN_HIDDEN)    # static MLP widths (-> rnn_hidden)
# rnn_type = 'LSTM', rnn_layer_num = 1, static_model = True


# --------------------------- fused forward kernel ---------------------------
def _temgnn_kernel(att_b_ref,                 # SMEM (1,)   scalar attention bias
                   static_x_ref,              # (N, STATIC_IN)
                   dyn_x_ref,                 # (T, N, DYN_IN)
                   a_ref,                     # (T, N, N)   normalized adjacency
                   mlp_w_ref, mlp_b_ref,      # (STATIC_IN, H), (1, H)
                   gnn_w1_ref, gnn_b1_ref,    # (T, DYN_IN, 32), (T, 1, 32)
                   gnn_w2_ref, gnn_b2_ref,    # (T, 32, RNN_IN), (T, 1, RNN_IN)
                   wih_ref, whh_ref, bg_ref,  # (4, RNN_IN, H), (4, H, H), (4, 1, H)
                   attw_ref,                  # (1, H)
                   out_ref):                  # (N, H)
    f32 = jnp.float32

    # ---- static MLP: relu(static_x @ W + b) ----
    static_embed = jnp.maximum(
        jnp.dot(static_x_ref[...], mlp_w_ref[...], preferred_element_type=f32)
        + mlp_b_ref[...], 0.0)                                   # (N, H)

    # ---- per-step GNN encoders (statically unrolled; independent over t) ----
    graph_embeds = []
    for t in range(WINDOW):
        A = a_ref[t]                                             # (N, N)
        h0 = dyn_x_ref[t]                                        # (N, DYN_IN)
        agg1 = jnp.dot(A, h0, preferred_element_type=f32)
        h1 = jnp.maximum(
            jnp.dot(agg1, gnn_w1_ref[t], preferred_element_type=f32)
            + gnn_b1_ref[t], 0.0)                                # (N, 32)
        agg2 = jnp.dot(A, h1, preferred_element_type=f32)
        h2 = (jnp.dot(agg2, gnn_w2_ref[t], preferred_element_type=f32)
              + gnn_b2_ref[t])                                   # (N, RNN_IN)
        graph_embeds.append(h2)

    # ---- LSTM: input projection hoisted out of the recurrence ----
    wih = wih_ref[...]                                           # (4, IN, H)
    whh = whh_ref[...]                                           # (4, H, H)
    bg = bg_ref[...]                                             # (4, 1, H)
    x_all = jnp.concatenate(graph_embeds, axis=0)                # (T*N, IN)
    # one (T*N, IN) @ (IN, H) matmul per gate (i, f, g, o), shared over time
    xg = [jnp.dot(x_all, wih[g], preferred_element_type=f32) + bg[g]
          for g in range(4)]                                     # 4 x (T*N, H)

    h = jnp.zeros((N_NODES, RNN_HIDDEN), f32)
    c = jnp.zeros((N_NODES, RNN_HIDDEN), f32)
    hs = []
    for t in range(WINDOW):
        r0 = t * N_NODES                                         # sublane slice
        gi = jax.nn.sigmoid(xg[0][r0:r0 + N_NODES]
                            + jnp.dot(h, whh[0], preferred_element_type=f32))
        gf = jax.nn.sigmoid(xg[1][r0:r0 + N_NODES]
                            + jnp.dot(h, whh[1], preferred_element_type=f32))
        gg = jnp.tanh(xg[2][r0:r0 + N_NODES]
                      + jnp.dot(h, whh[2], preferred_element_type=f32))
        go = jax.nn.sigmoid(xg[3][r0:r0 + N_NODES]
                            + jnp.dot(h, whh[3], preferred_element_type=f32))
        c = gf * c + gi * gg
        h = go * jnp.tanh(c)
        hs.append(h)                                             # (N, H)

    # ---- attention pool over [static_embed, h_0 .. h_{T-1}] ----
    attw = attw_ref[...]                                         # (1, H)
    att_b = att_b_ref[0]                                         # scalar (SMEM)
    embeds = [static_embed] + hs                                 # T+1 x (N, H)
    scores = [jnp.sum(jnp.tanh(e) * attw, axis=-1, keepdims=True) + att_b
              for e in embeds]                                   # T+1 x (N, 1)
    m = scores[0]
    for s in scores[1:]:
        m = jnp.maximum(m, s)
    exps = [jnp.exp(s - m) for s in scores]
    denom = exps[0]
    for ex in exps[1:]:
        denom = denom + ex
    acc = embeds[0] * exps[0]
    for e, ex in zip(embeds[1:], exps[1:]):
        acc = acc + e * ex
    out_ref[...] = acc / denom                                   # (N, H)


def temgnn_pallas(att_b, static_x, dyn_x, A, mlp_w, mlp_b,
                  gnn_w1, gnn_b1, gnn_w2, gnn_b2,
                  wih, whh, b_gate, attw):
    smem = pl.BlockSpec(memory_space=pltpu.MemorySpace.SMEM)
    vmem_specs = [pl.BlockSpec(memory_space=pltpu.MemorySpace.VMEM)
                  for _ in range(13)]
    return pl.pallas_call(
        _temgnn_kernel,
        out_shape=jax.ShapeDtypeStruct((N_NODES, RNN_HIDDEN), jnp.float32),
        in_specs=[smem] + vmem_specs,
        out_specs=pl.BlockSpec(memory_space=pltpu.MemorySpace.VMEM),
        compiler_params=pltpu.CompilerParams(
            vmem_limit_bytes=8 * 1024 * 1024),
    )(att_b, static_x, dyn_x, A, mlp_w, mlp_b,
      gnn_w1, gnn_b1, gnn_w2, gnn_b2, wih, whh, b_gate, attw)


# ------------------------------- plain-JAX glue ------------------------------
def build_norm_adj(edges_t, weights_t):
    """Symmetric-normalized adjacency (GCN style) from one edge list."""
    src, dst = edges_t[0], edges_t[1]
    A = jnp.zeros((N_NODES, N_NODES), jnp.float32)
    A = A.at[src, dst].add(weights_t)
    A = A.at[dst, src].add(weights_t)
    A = A + jnp.eye(N_NODES, dtype=jnp.float32)
    d = jnp.sum(A, axis=1)
    dinv = 1.0 / jnp.sqrt(jnp.maximum(d, 1e-12))
    return A * dinv[:, None] * dinv[None, :]


def init_params(key):
    def nrm(k, shape):
        return 0.1 * jax.random.normal(k, shape, jnp.float32)

    keys = iter(jax.random.split(key, 64))
    p = {}
    p["static_embeds"] = [nrm(next(keys), (d, ENTITY_DIM))
                          for d in STATIC_SPARSE_DIMS]
    p["dynamic_embeds"] = [nrm(next(keys), (d, ENTITY_DIM))
                           for d in DYNAMIC_SPARSE_DIMS]
    # static MLP (single linear layer [22 -> 32])
    p["mlp_W"] = nrm(next(keys), (STATIC_LAYERS[0], STATIC_LAYERS[1]))
    p["mlp_b"] = nrm(next(keys), (STATIC_LAYERS[1],))
    # one independent GNN encoder per window step, weights stacked over t
    p["gnn_W1"] = nrm(next(keys), (WINDOW, GNN_LAYERS[0], GNN_LAYERS[1]))
    p["gnn_b1"] = nrm(next(keys), (WINDOW, 1, GNN_LAYERS[1]))
    p["gnn_W2"] = nrm(next(keys), (WINDOW, GNN_LAYERS[1], GNN_LAYERS[2]))
    p["gnn_b2"] = nrm(next(keys), (WINDOW, 1, GNN_LAYERS[2]))
    # single-layer LSTM, per-gate layout (PyTorch gate order i, f, g, o)
    p["W_ih"] = nrm(next(keys), (4, RNN_IN, RNN_HIDDEN))
    p["W_hh"] = nrm(next(keys), (4, RNN_HIDDEN, RNN_HIDDEN))
    p["b_ih"] = nrm(next(keys), (4, RNN_HIDDEN))
    p["b_hh"] = nrm(next(keys), (4, RNN_HIDDEN))
    # attention linear (H -> 1)
    p["att_w"] = nrm(next(keys), (RNN_HIDDEN,))
    p["att_b"] = nrm(next(keys), (1,))
    return p


def temgnn_forward(params, static_dense_x, static_sparse_x,
                   dynamic_dense_x, dynamic_sparse_x, edges, weights):
    # ---- Embedding_layer (batched gathers over the window) ----
    static_emb = jnp.concatenate(
        [params["static_embeds"][i][static_sparse_x[:, i]]
         for i in range(len(STATIC_SPARSE_DIMS))], axis=-1)
    static_x = jnp.concatenate([static_emb, static_dense_x], axis=-1)  # (N,22)

    dyn_emb = jnp.concatenate(
        [params["dynamic_embeds"][i][dynamic_sparse_x[:, :, i]]
         for i in range(len(DYNAMIC_SPARSE_DIMS))], axis=-1)       # (T,N,16)
    dyn_x = jnp.concatenate([dyn_emb, dynamic_dense_x], axis=-1)   # (T,N,21)

    # ---- normalized adjacencies for all steps at once ----
    A = jax.vmap(build_norm_adj)(edges, weights)                   # (T,N,N)

    # LSTM biases combined once (b_ih + b_hh), per gate
    b_gate = (params["b_ih"] + params["b_hh"]).reshape(4, 1, RNN_HIDDEN)

    # ---- single fused Pallas kernel for the rest of the forward ----
    return temgnn_pallas(
        params["att_b"].reshape(1).astype(jnp.float32),
        static_x.astype(jnp.float32),
        dyn_x.astype(jnp.float32),
        A,
        params["mlp_W"], params["mlp_b"].reshape(1, -1),
        params["gnn_W1"], params["gnn_b1"],
        params["gnn_W2"], params["gnn_b2"],
        params["W_ih"], params["W_hh"], b_gate,
        params["att_w"].reshape(1, RNN_HIDDEN))


# ----------------------------------- main ------------------------------------
if __name__ == "__main__":
    key = jax.random.PRNGKey(0)
    k_par, k_sd, k_ss, k_dd, k_ds, k_e, k_w = jax.random.split(key, 7)

    params = init_params(k_par)

    static_dense_x = jax.random.normal(k_sd, (N_NODES, STATIC_DENSE_DIM),
                                       jnp.float32)
    static_sparse_x = jnp.stack(
        [jax.random.randint(jax.random.fold_in(k_ss, i), (N_NODES,), 0, d)
         for i, d in enumerate(STATIC_SPARSE_DIMS)], axis=1).astype(jnp.int32)

    dynamic_dense_x = jax.random.normal(
        k_dd, (WINDOW, N_NODES, DYNAMIC_DENSE_DIM), jnp.float32)
    dynamic_sparse_x = jnp.stack(
        [jnp.stack(
            [jax.random.randint(jax.random.fold_in(k_ds, 10 * t + i),
                                (N_NODES,), 0, d)
             for i, d in enumerate(DYNAMIC_SPARSE_DIMS)], axis=1)
         for t in range(WINDOW)], axis=0).astype(jnp.int32)

    edges = jax.random.randint(k_e, (WINDOW, 2, N_EDGES), 0,
                               N_NODES).astype(jnp.int32)
    weights = jax.nn.softplus(
        jax.random.normal(k_w, (WINDOW, N_EDGES), jnp.float32))

    fwd = jax.jit(temgnn_forward)
    out = fwd(params, static_dense_x, static_sparse_x,
              dynamic_dense_x, dynamic_sparse_x, edges, weights)
    jax.block_until_ready(out)
    assert out.shape == (N_NODES, RNN_HIDDEN)
    assert bool(jnp.all(jnp.isfinite(out)))
    print("KERNEL_OK")
</pallas_src>

<mosaic_0001>
module attributes {stable_mosaic.version = 11 : i64} {
  func.func private @main(%arg0: i32) attributes {dimension_semantics = [#tpu.dimension_semantics<core_parallel>], iteration_bounds = array<i64: 2>, tpu.core_type = #tpu.core_type<sc_scalar_subcore>, window_params = []} {
    return
  }
}

module attributes {stable_mosaic.version = 11 : i64} {
  func.func private @main(%arg0: i32) attributes {dimension_semantics = [#tpu.dimension_semantics<core_parallel>], iteration_bounds = array<i64: 2>, tpu.core_type = #tpu.core_type<sc_scalar_subcore>, window_params = []} {
    return
  }
}

module attributes {stable_mosaic.version = 11 : i64} {
  func.func @_temgnn_kernel(%arg0: memref<1xf32, #tpu.memory_space<smem>>, %arg1: memref<16x22xf32, #tpu.memory_space<vmem>>, %arg2: memref<4x16x21xf32, #tpu.memory_space<vmem>>, %arg3: memref<4x16x16xf32, #tpu.memory_space<vmem>>, %arg4: memref<22x32xf32, #tpu.memory_space<vmem>>, %arg5: memref<1x32xf32, #tpu.memory_space<vmem>>, %arg6: memref<4x21x32xf32, #tpu.memory_space<vmem>>, %arg7: memref<4x1x32xf32, #tpu.memory_space<vmem>>, %arg8: memref<4x32x24xf32, #tpu.memory_space<vmem>>, %arg9: memref<4x1x24xf32, #tpu.memory_space<vmem>>, %arg10: memref<4x24x32xf32, #tpu.memory_space<vmem>>, %arg11: memref<4x32x32xf32, #tpu.memory_space<vmem>>, %arg12: memref<4x1x32xf32, #tpu.memory_space<vmem>>, %arg13: memref<1x32xf32, #tpu.memory_space<vmem>>, %arg14: memref<16x32xf32, #tpu.memory_space<vmem>>) attributes {dimension_semantics = [], scalar_prefetch = 0 : i64, scratch_operands = 0 : i64, tpu.core_type = #tpu.core_type<tc>} {
    %c0 = arith.constant 0 : index
    %c0_0 = arith.constant 0 : index
    %0 = vector.load %arg1[%c0, %c0_0] : memref<16x22xf32, #tpu.memory_space<vmem>>, vector<16x22xf32>
    %c0_1 = arith.constant 0 : index
    %c0_2 = arith.constant 0 : index
    %1 = vector.load %arg4[%c0_1, %c0_2] : memref<22x32xf32, #tpu.memory_space<vmem>>, vector<22x32xf32>
    %cst = arith.constant dense<0.000000e+00> : vector<16x32xf32>
    %2 = tpu.matmul %0, %1, %cst {dimension_numbers = #tpu.dot_dimension_numbers<[1], [0], [0], [1], [0, 0, 1, 1], [], []>} : vector<16x22xf32>, vector<22x32xf32>, vector<16x32xf32> -> vector<16x32xf32>
    %c0_3 = arith.constant 0 : index
    %c0_4 = arith.constant 0 : index
    %3 = vector.load %arg5[%c0_3, %c0_4] : memref<1x32xf32, #tpu.memory_space<vmem>>, vector<1x32xf32>
    %4 = vector.broadcast %3 : vector<1x32xf32> to vector<16x32xf32>
    %5 = arith.addf %2, %4 : vector<16x32xf32>
    %cst_5 = arith.constant 0.000000e+00 : f32
    %6 = vector.broadcast %cst_5 : f32 to vector<16x32xf32>
    %7 = arith.maximumf %5, %6 : vector<16x32xf32>
    %c0_6 = arith.constant 0 : index
    %c0_7 = arith.constant 0 : index
    %c0_8 = arith.constant 0 : index
    %8 = vector.load %arg3[%c0_6, %c0_7, %c0_8] : memref<4x16x16xf32, #tpu.memory_space<vmem>>, vector<1x16x16xf32>
    %9 = vector.shape_cast %8 : vector<1x16x16xf32> to vector<16x16xf32>
    %c0_9 = arith.constant 0 : index
    %c0_10 = arith.constant 0 : index
    %c0_11 = arith.constant 0 : index
    %10 = vector.load %arg2[%c0_9, %c0_10, %c0_11] : memref<4x16x21xf32, #tpu.memory_space<vmem>>, vector<1x16x21xf32>
    %11 = vector.shape_cast %10 : vector<1x16x21xf32> to vector<16x21xf32>
    %cst_12 = arith.constant dense<0.000000e+00> : vector<16x21xf32>
    %12 = tpu.matmul %9, %11, %cst_12 {dimension_numbers = #tpu.dot_dimension_numbers<[1], [0], [0], [1], [0, 0, 1, 1], [], []>} : vector<16x16xf32>, vector<16x21xf32>, vector<16x21xf32> -> vector<16x21xf32>
    %c0_13 = arith.constant 0 : index
    %c0_14 = arith.constant 0 : index
    %c0_15 = arith.constant 0 : index
    %13 = vector.load %arg6[%c0_13, %c0_14, %c0_15] : memref<4x21x32xf32, #tpu.memory_space<vmem>>, vector<1x21x32xf32>
    %14 = vector.shape_cast %13 : vector<1x21x32xf32> to vector<21x32xf32>
    %cst_16 = arith.constant dense<0.000000e+00> : vector<16x32xf32>
    %15 = tpu.matmul %12, %14, %cst_16 {dimension_numbers = #tpu.dot_dimension_numbers<[1], [0], [0], [1], [0, 0, 1, 1], [], []>} : vector<16x21xf32>, vector<21x32xf32>, vector<16x32xf32> -> vector<16x32xf32>
    %c0_17 = arith.constant 0 : index
    %c0_18 = arith.constant 0 : index
    %c0_19 = arith.constant 0 : index
    %16 = vector.load %arg7[%c0_17, %c0_18, %c0_19] : memref<4x1x32xf32, #tpu.memory_space<vmem>>, vector<1x1x32xf32>
    %17 = vector.shape_cast %16 : vector<1x1x32xf32> to vector<1x32xf32>
    %18 = vector.broadcast %17 : vector<1x32xf32> to vector<16x32xf32>
    %19 = arith.addf %15, %18 : vector<16x32xf32>
    %cst_20 = arith.constant 0.000000e+00 : f32
    %20 = vector.broadcast %cst_20 : f32 to vector<16x32xf32>
    %21 = arith.maximumf %19, %20 : vector<16x32xf32>
    %cst_21 = arith.constant dense<0.000000e+00> : vector<16x32xf32>
    %22 = tpu.matmul %9, %21, %cst_21 {dimension_numbers = #tpu.dot_dimension_numbers<[1], [0], [0], [1], [0, 0, 1, 1], [], []>} : vector<16x16xf32>, vector<16x32xf32>, vector<16x32xf32> -> vector<16x32xf32>
    %c0_22 = arith.constant 0 : index
    %c0_23 = arith.constant 0 : index
    %c0_24 = arith.constant 0 : index
    %23 = vector.load %arg8[%c0_22, %c0_23, %c0_24] : memref<4x32x24xf32, #tpu.memory_space<vmem>>, vector<1x32x24xf32>
    %24 = vector.shape_cast %23 : vector<1x32x24xf32> to vector<32x24xf32>
    %cst_25 = arith.constant dense<0.000000e+00> : vector<16x24xf32>
    %25 = tpu.matmul %22, %24, %cst_25 {dimension_numbers = #tpu.dot_dimension_numbers<[1], [0], [0], [1], [0, 0, 1, 1], [], []>} : vector<16x32xf32>, vector<32x24xf32>, vector<16x24xf32> -> vector<16x24xf32>
    %c0_26 = arith.constant 0 : index
    %c0_27 = arith.constant 0 : index
    %c0_28 = arith.constant 0 : index
    %26 = vector.load %arg9[%c0_26, %c0_27, %c0_28] : memref<4x1x24xf32, #tpu.memory_space<vmem>>, vector<1x1x24xf32>
    %27 = vector.shape_cast %26 : vector<1x1x24xf32> to vector<1x24xf32>
    %28 = vector.broadcast %27 : vector<1x24xf32> to vector<16x24xf32>
    %29 = arith.addf %25, %28 : vector<16x24xf32>
    %c1 = arith.constant 1 : index
    %c0_29 = arith.constant 0 : index
    %c0_30 = arith.constant 0 : index
    %30 = vector.load %arg3[%c1, %c0_29, %c0_30] : memref<4x16x16xf32, #tpu.memory_space<vmem>>, vector<1x16x16xf32>
    %31 = vector.shape_cast %30 : vector<1x16x16xf32> to vector<16x16xf32>
    %c1_31 = arith.constant 1 : index
    %c0_32 = arith.constant 0 : index
    %c0_33 = arith.constant 0 : index
    %32 = vector.load %arg2[%c1_31, %c0_32, %c0_33] : memref<4x16x21xf32, #tpu.memory_space<vmem>>, vector<1x16x21xf32>
    %33 = vector.shape_cast %32 : vector<1x16x21xf32> to vector<16x21xf32>
    %cst_34 = arith.constant dense<0.000000e+00> : vector<16x21xf32>
    %34 = tpu.matmul %31, %33, %cst_34 {dimension_numbers = #tpu.dot_dimension_numbers<[1], [0], [0], [1], [0, 0, 1, 1], [], []>} : vector<16x16xf32>, vector<16x21xf32>, vector<16x21xf32> -> vector<16x21xf32>
    %c1_35 = arith.constant 1 : index
    %c0_36 = arith.constant 0 : index
    %c0_37 = arith.constant 0 : index
    %35 = vector.load %arg6[%c1_35, %c0_36, %c0_37] : memref<4x21x32xf32, #tpu.memory_space<vmem>>, vector<1x21x32xf32>
    %36 = vector.shape_cast %35 : vector<1x21x32xf32> to vector<21x32xf32>
    %cst_38 = arith.constant dense<0.000000e+00> : vector<16x32xf32>
    %37 = tpu.matmul %34, %36, %cst_38 {dimension_numbers = #tpu.dot_dimension_numbers<[1], [0], [0], [1], [0, 0, 1, 1], [], []>} : vector<16x21xf32>, vector<21x32xf32>, vector<16x32xf32> -> vector<16x32xf32>
    %c1_39 = arith.constant 1 : index
    %c0_40 = arith.constant 0 : index
    %c0_41 = arith.constant 0 : index
    %38 = vector.load %arg7[%c1_39, %c0_40, %c0_41] : memref<4x1x32xf32, #tpu.memory_space<vmem>>, vector<1x1x32xf32>
    %39 = vector.shape_cast %38 : vector<1x1x32xf32> to vector<1x32xf32>
    %40 = vector.broadcast %39 : vector<1x32xf32> to vector<16x32xf32>
    %41 = arith.addf %37, %40 : vector<16x32xf32>
    %cst_42 = arith.constant 0.000000e+00 : f32
    %42 = vector.broadcast %cst_42 : f32 to vector<16x32xf32>
    %43 = arith.maximumf %41, %42 : vector<16x32xf32>
    %cst_43 = arith.constant dense<0.000000e+00> : vector<16x32xf32>
    %44 = tpu.matmul %31, %43, %cst_43 {dimension_numbers = #tpu.dot_dimension_numbers<[1], [0], [0], [1], [0, 0, 1, 1], [], []>} : vector<16x16xf32>, vector<16x32xf32>, vector<16x32xf32> -> vector<16x32xf32>
    %c1_44 = arith.constant 1 : index
    %c0_45 = arith.constant 0 : index
    %c0_46 = arith.constant 0 : index
    %45 = vector.load %arg8[%c1_44, %c0_45, %c0_46] : memref<4x32x24xf32, #tpu.memory_space<vmem>>, vector<1x32x24xf32>
    %46 = vector.shape_cast %45 : vector<1x32x24xf32> to vector<32x24xf32>
    %cst_47 = arith.constant dense<0.000000e+00> : vector<16x24xf32>
    %47 = tpu.matmul %44, %46, %cst_47 {dimension_numbers = #tpu.dot_dimension_numbers<[1], [0], [0], [1], [0, 0, 1, 1], [], []>} : vector<16x32xf32>, vector<32x24xf32>, vector<16x24xf32> -> vector<16x24xf32>
    %c1_48 = arith.constant 1 : index
    %c0_49 = arith.constant 0 : index
    %c0_50 = arith.constant 0 : index
    %48 = vector.load %arg9[%c1_48, %c0_49, %c0_50] : memref<4x1x24xf32, #tpu.memory_space<vmem>>, vector<1x1x24xf32>
    %49 = vector.shape_cast %48 : vector<1x1x24xf32> to vector<1x24xf32>
    %50 = vector.broadcast %49 : vector<1x24xf32> to vector<16x24xf32>
    %51 = arith.addf %47, %50 : vector<16x24xf32>
    %c2 = arith.constant 2 : index
    %c0_51 = arith.constant 0 : index
    %c0_52 = arith.constant 0 : index
    %52 = vector.load %arg3[%c2, %c0_51, %c0_52] : memref<4x16x16xf32, #tpu.memory_space<vmem>>, vector<1x16x16xf32>
    %53 = vector.shape_cast %52 : vector<1x16x16xf32> to vector<16x16xf32>
    %c2_53 = arith.constant 2 : index
    %c0_54 = arith.constant 0 : index
    %c0_55 = arith.constant 0 : index
    %54 = vector.load %arg2[%c2_53, %c0_54, %c0_55] : memref<4x16x21xf32, #tpu.memory_space<vmem>>, vector<1x16x21xf32>
    %55 = vector.shape_cast %54 : vector<1x16x21xf32> to vector<16x21xf32>
    %cst_56 = arith.constant dense<0.000000e+00> : vector<16x21xf32>
    %56 = tpu.matmul %53, %55, %cst_56 {dimension_numbers = #tpu.dot_dimension_numbers<[1], [0], [0], [1], [0, 0, 1, 1], [], []>} : vector<16x16xf32>, vector<16x21xf32>, vector<16x21xf32> -> vector<16x21xf32>
    %c2_57 = arith.constant 2 : index
    %c0_58 = arith.constant 0 : index
    %c0_59 = arith.constant 0 : index
    %57 = vector.load %arg6[%c2_57, %c0_58, %c0_59] : memref<4x21x32xf32, #tpu.memory_space<vmem>>, vector<1x21x32xf32>
    %58 = vector.shape_cast %57 : vector<1x21x32xf32> to vector<21x32xf32>
    %cst_60 = arith.constant dense<0.000000e+00> : vector<16x32xf32>
    %59 = tpu.matmul %56, %58, %cst_60 {dimension_numbers = #tpu.dot_dimension_numbers<[1], [0], [0], [1], [0, 0, 1, 1], [], []>} : vector<16x21xf32>, vector<21x32xf32>, vector<16x32xf32> -> vector<16x32xf32>
    %c2_61 = arith.constant 2 : index
    %c0_62 = arith.constant 0 : index
    %c0_63 = arith.constant 0 : index
    %60 = vector.load %arg7[%c2_61, %c0_62, %c0_63] : memref<4x1x32xf32, #tpu.memory_space<vmem>>, vector<1x1x32xf32>
    %61 = vector.shape_cast %60 : vector<1x1x32xf32> to vector<1x32xf32>
    %62 = vector.broadcast %61 : vector<1x32xf32> to vector<16x32xf32>
    %63 = arith.addf %59, %62 : vector<16x32xf32>
    %cst_64 = arith.constant 0.000000e+00 : f32
    %64 = vector.broadcast %cst_64 : f32 to vector<16x32xf32>
    %65 = arith.maximumf %63, %64 : vector<16x32xf32>
    %cst_65 = arith.constant dense<0.000000e+00> : vector<16x32xf32>
    %66 = tpu.matmul %53, %65, %cst_65 {dimension_numbers = #tpu.dot_dimension_numbers<[1], [0], [0], [1], [0, 0, 1, 1], [], []>} : vector<16x16xf32>, vector<16x32xf32>, vector<16x32xf32> -> vector<16x32xf32>
    %c2_66 = arith.constant 2 : index
    %c0_67 = arith.constant 0 : index
    %c0_68 = arith.constant 0 : index
    %67 = vector.load %arg8[%c2_66, %c0_67, %c0_68] : memref<4x32x24xf32, #tpu.memory_space<vmem>>, vector<1x32x24xf32>
    %68 = vector.shape_cast %67 : vector<1x32x24xf32> to vector<32x24xf32>
    %cst_69 = arith.constant dense<0.000000e+00> : vector<16x24xf32>
    %69 = tpu.matmul %66, %68, %cst_69 {dimension_numbers = #tpu.dot_dimension_numbers<[1], [0], [0], [1], [0, 0, 1, 1], [], []>} : vector<16x32xf32>, vector<32x24xf32>, vector<16x24xf32> -> vector<16x24xf32>
    %c2_70 = arith.constant 2 : index
    %c0_71 = arith.constant 0 : index
    %c0_72 = arith.constant 0 : index
    %70 = vector.load %arg9[%c2_70, %c0_71, %c0_72] : memref<4x1x24xf32, #tpu.memory_space<vmem>>, vector<1x1x24xf32>
    %71 = vector.shape_cast %70 : vector<1x1x24xf32> to vector<1x24xf32>
    %72 = vector.broadcast %71 : vector<1x24xf32> to vector<16x24xf32>
    %73 = arith.addf %69, %72 : vector<16x24xf32>
    %c3 = arith.constant 3 : index
    %c0_73 = arith.constant 0 : index
    %c0_74 = arith.constant 0 : index
    %74 = vector.load %arg3[%c3, %c0_73, %c0_74] : memref<4x16x16xf32, #tpu.memory_space<vmem>>, vector<1x16x16xf32>
    %75 = vector.shape_cast %74 : vector<1x16x16xf32> to vector<16x16xf32>
    %c3_75 = arith.constant 3 : index
    %c0_76 = arith.constant 0 : index
    %c0_77 = arith.constant 0 : index
    %76 = vector.load %arg2[%c3_75, %c0_76, %c0_77] : memref<4x16x21xf32, #tpu.memory_space<vmem>>, vector<1x16x21xf32>
    %77 = vector.shape_cast %76 : vector<1x16x21xf32> to vector<16x21xf32>
    %cst_78 = arith.constant dense<0.000000e+00> : vector<16x21xf32>
    %78 = tpu.matmul %75, %77, %cst_78 {dimension_numbers = #tpu.dot_dimension_numbers<[1], [0], [0], [1], [0, 0, 1, 1], [], []>} : vector<16x16xf32>, vector<16x21xf32>, vector<16x21xf32> -> vector<16x21xf32>
    %c3_79 = arith.constant 3 : index
    %c0_80 = arith.constant 0 : index
    %c0_81 = arith.constant 0 : index
    %79 = vector.load %arg6[%c3_79, %c0_80, %c0_81] : memref<4x21x32xf32, #tpu.memory_space<vmem>>, vector<1x21x32xf32>
    %80 = vector.shape_cast %79 : vector<1x21x32xf32> to vector<21x32xf32>
    %cst_82 = arith.constant dense<0.000000e+00> : vector<16x32xf32>
    %81 = tpu.matmul %78, %80, %cst_82 {dimension_numbers = #tpu.dot_dimension_numbers<[1], [0], [0], [1], [0, 0, 1, 1], [], []>} : vector<16x21xf32>, vector<21x32xf32>, vector<16x32xf32> -> vector<16x32xf32>
    %c3_83 = arith.constant 3 : index
    %c0_84 = arith.constant 0 : index
    %c0_85 = arith.constant 0 : index
    %82 = vector.load %arg7[%c3_83, %c0_84, %c0_85] : memref<4x1x32xf32, #tpu.memory_space<vmem>>, vector<1x1x32xf32>
    %83 = vector.shape_cast %82 : vector<1x1x32xf32> to vector<1x32xf32>
    %84 = vector.broadcast %83 : vector<1x32xf32> to vector<16x32xf32>
    %85 = arith.addf %81, %84 : vector<16x32xf32>
    %cst_86 = arith.constant 0.000000e+00 : f32
    %86 = vector.broadcast %cst_86 : f32 to vector<16x32xf32>
    %87 = arith.maximumf %85, %86 : vector<16x32xf32>
    %cst_87 = arith.constant dense<0.000000e+00> : vector<16x32xf32>
    %88 = tpu.matmul %75, %87, %cst_87 {dimension_numbers = #tpu.dot_dimension_numbers<[1], [0], [0], [1], [0, 0, 1, 1], [], []>} : vector<16x16xf32>, vector<16x32xf32>, vector<16x32xf32> -> vector<16x32xf32>
    %c3_88 = arith.constant 3 : index
    %c0_89 = arith.constant 0 : index
    %c0_90 = arith.constant 0 : index
    %89 = vector.load %arg8[%c3_88, %c0_89, %c0_90] : memref<4x32x24xf32, #tpu.memory_space<vmem>>, vector<1x32x24xf32>
    %90 = vector.shape_cast %89 : vector<1x32x24xf32> to vector<32x24xf32>
    %cst_91 = arith.constant dense<0.000000e+00> : vector<16x24xf32>
    %91 = tpu.matmul %88, %90, %cst_91 {dimension_numbers = #tpu.dot_dimension_numbers<[1], [0], [0], [1], [0, 0, 1, 1], [], []>} : vector<16x32xf32>, vector<32x24xf32>, vector<16x24xf32> -> vector<16x24xf32>
    %c3_92 = arith.constant 3 : index
    %c0_93 = arith.constant 0 : index
    %c0_94 = arith.constant 0 : index
    %92 = vector.load %arg9[%c3_92, %c0_93, %c0_94] : memref<4x1x24xf32, #tpu.memory_space<vmem>>, vector<1x1x24xf32>
    %93 = vector.shape_cast %92 : vector<1x1x24xf32> to vector<1x24xf32>
    %94 = vector.broadcast %93 : vector<1x24xf32> to vector<16x24xf32>
    %95 = arith.addf %91, %94 : vector<16x24xf32>
    %c0_95 = arith.constant 0 : index
    %c0_96 = arith.constant 0 : index
    %c0_97 = arith.constant 0 : index
    %96 = vector.load %arg10[%c0_95, %c0_96, %c0_97] : memref<4x24x32xf32, #tpu.memory_space<vmem>>, vector<4x24x32xf32>
    %c0_98 = arith.constant 0 : index
    %c0_99 = arith.constant 0 : index
    %c0_100 = arith.constant 0 : index
    %97 = vector.load %arg11[%c0_98, %c0_99, %c0_100] : memref<4x32x32xf32, #tpu.memory_space<vmem>>, vector<4x32x32xf32>
    %c0_101 = arith.constant 0 : index
    %c0_102 = arith.constant 0 : index
    %c0_103 = arith.constant 0 : index
    %98 = vector.load %arg12[%c0_101, %c0_102, %c0_103] : memref<4x1x32xf32, #tpu.memory_space<vmem>>, vector<4x1x32xf32>
    %99 = tpu.concatenate %29, %51, %73, %95 in 0 : vector<16x24xf32>, vector<16x24xf32>, vector<16x24xf32>, vector<16x24xf32> -> vector<64x24xf32>
    %100 = vector.extract_strided_slice %96 {offsets = [0, 0, 0], sizes = [1, 24, 32], strides = [1, 1, 1]} : vector<4x24x32xf32> to vector<1x24x32xf32>
    %101 = vector.shape_cast %100 : vector<1x24x32xf32> to vector<24x32xf32>
    %cst_104 = arith.constant dense<0.000000e+00> : vector<64x32xf32>
    %102 = tpu.matmul %99, %101, %cst_104 {dimension_numbers = #tpu.dot_dimension_numbers<[1], [0], [0], [1], [0, 0, 1, 1], [], []>} : vector<64x24xf32>, vector<24x32xf32>, vector<64x32xf32> -> vector<64x32xf32>
    %103 = vector.extract_strided_slice %98 {offsets = [0, 0, 0], sizes = [1, 1, 32], strides = [1, 1, 1]} : vector<4x1x32xf32> to vector<1x1x32xf32>
    %104 = vector.shape_cast %103 : vector<1x1x32xf32> to vector<1x32xf32>
    %105 = vector.broadcast %104 : vector<1x32xf32> to vector<64x32xf32>
    %106 = arith.addf %102, %105 : vector<64x32xf32>
    %107 = vector.extract_strided_slice %96 {offsets = [1, 0, 0], sizes = [1, 24, 32], strides = [1, 1, 1]} : vector<4x24x32xf32> to vector<1x24x32xf32>
    %108 = vector.shape_cast %107 : vector<1x24x32xf32> to vector<24x32xf32>
    %cst_105 = arith.constant dense<0.000000e+00> : vector<64x32xf32>
    %109 = tpu.matmul %99, %108, %cst_105 {dimension_numbers = #tpu.dot_dimension_numbers<[1], [0], [0], [1], [0, 0, 1, 1], [], []>} : vector<64x24xf32>, vector<24x32xf32>, vector<64x32xf32> -> vector<64x32xf32>
    %110 = vector.extract_strided_slice %98 {offsets = [1, 0, 0], sizes = [1, 1, 32], strides = [1, 1, 1]} : vector<4x1x32xf32> to vector<1x1x32xf32>
    %111 = vector.shape_cast %110 : vector<1x1x32xf32> to vector<1x32xf32>
    %112 = vector.broadcast %111 : vector<1x32xf32> to vector<64x32xf32>
    %113 = arith.addf %109, %112 : vector<64x32xf32>
    %114 = vector.extract_strided_slice %96 {offsets = [2, 0, 0], sizes = [1, 24, 32], strides = [1, 1, 1]} : vector<4x24x32xf32> to vector<1x24x32xf32>
    %115 = vector.shape_cast %114 : vector<1x24x32xf32> to vector<24x32xf32>
    %cst_106 = arith.constant dense<0.000000e+00> : vector<64x32xf32>
    %116 = tpu.matmul %99, %115, %cst_106 {dimension_numbers = #tpu.dot_dimension_numbers<[1], [0], [0], [1], [0, 0, 1, 1], [], []>} : vector<64x24xf32>, vector<24x32xf32>, vector<64x32xf32> -> vector<64x32xf32>
    %117 = vector.extract_strided_slice %98 {offsets = [2, 0, 0], sizes = [1, 1, 32], strides = [1, 1, 1]} : vector<4x1x32xf32> to vector<1x1x32xf32>
    %118 = vector.shape_cast %117 : vector<1x1x32xf32> to vector<1x32xf32>
    %119 = vector.broadcast %118 : vector<1x32xf32> to vector<64x32xf32>
    %120 = arith.addf %116, %119 : vector<64x32xf32>
    %121 = vector.extract_strided_slice %96 {offsets = [3, 0, 0], sizes = [1, 24, 32], strides = [1, 1, 1]} : vector<4x24x32xf32> to vector<1x24x32xf32>
    %122 = vector.shape_cast %121 : vector<1x24x32xf32> to vector<24x32xf32>
    %cst_107 = arith.constant dense<0.000000e+00> : vector<64x32xf32>
    %123 = tpu.matmul %99, %122, %cst_107 {dimension_numbers = #tpu.dot_dimension_numbers<[1], [0], [0], [1], [0, 0, 1, 1], [], []>} : vector<64x24xf32>, vector<24x32xf32>, vector<64x32xf32> -> vector<64x32xf32>
    %124 = vector.extract_strided_slice %98 {offsets = [3, 0, 0], sizes = [1, 1, 32], strides = [1, 1, 1]} : vector<4x1x32xf32> to vector<1x1x32xf32>
    %125 = vector.shape_cast %124 : vector<1x1x32xf32> to vector<1x32xf32>
    %126 = vector.broadcast %125 : vector<1x32xf32> to vector<64x32xf32>
    %127 = arith.addf %123, %126 : vector<64x32xf32>
    %cst_108 = arith.constant 0.000000e+00 : f32
    %128 = vector.broadcast %cst_108 : f32 to vector<16x32xf32>
    %cst_109 = arith.constant 0.000000e+00 : f32
    %129 = vector.broadcast %cst_109 : f32 to vector<16x32xf32>
    %130 = vector.extract_strided_slice %106 {offsets = [0, 0], sizes = [16, 32], strides = [1, 1]} : vector<64x32xf32> to vector<16x32xf32>
    %131 = vector.extract_strided_slice %97 {offsets = [0, 0, 0], sizes = [1, 32, 32], strides = [1, 1, 1]} : vector<4x32x32xf32> to vector<1x32x32xf32>
    %132 = vector.shape_cast %131 : vector<1x32x32xf32> to vector<32x32xf32>
    %cst_110 = arith.constant dense<0.000000e+00> : vector<16x32xf32>
    %133 = tpu.matmul %128, %132, %cst_110 {dimension_numbers = #tpu.dot_dimension_numbers<[1], [0], [0], [1], [0, 0, 1, 1], [], []>} : vector<16x32xf32>, vector<32x32xf32>, vector<16x32xf32> -> vector<16x32xf32>
    %134 = arith.addf %130, %133 : vector<16x32xf32>
    %135 = arith.negf %134 : vector<16x32xf32>
    %136 = math.exp %135 : vector<16x32xf32>
    %cst_111 = arith.constant 1.000000e+00 : f32
    %137 = vector.broadcast %cst_111 : f32 to vector<16x32xf32>
    %138 = arith.addf %137, %136 : vector<16x32xf32>
    %139 = arith.divf %137, %138 : vector<16x32xf32>
    %140 = vector.extract_strided_slice %113 {offsets = [0, 0], sizes = [16, 32], strides = [1, 1]} : vector<64x32xf32> to vector<16x32xf32>
    %141 = vector.extract_strided_slice %97 {offsets = [1, 0, 0], sizes = [1, 32, 32], strides = [1, 1, 1]} : vector<4x32x32xf32> to vector<1x32x32xf32>
    %142 = vector.shape_cast %141 : vector<1x32x32xf32> to vector<32x32xf32>
    %cst_112 = arith.constant dense<0.000000e+00> : vector<16x32xf32>
    %143 = tpu.matmul %128, %142, %cst_112 {dimension_numbers = #tpu.dot_dimension_numbers<[1], [0], [0], [1], [0, 0, 1, 1], [], []>} : vector<16x32xf32>, vector<32x32xf32>, vector<16x32xf32> -> vector<16x32xf32>
    %144 = arith.addf %140, %143 : vector<16x32xf32>
    %145 = arith.negf %144 : vector<16x32xf32>
    %146 = math.exp %145 : vector<16x32xf32>
    %cst_113 = arith.constant 1.000000e+00 : f32
    %147 = vector.broadcast %cst_113 : f32 to vector<16x32xf32>
    %148 = arith.addf %147, %146 : vector<16x32xf32>
    %149 = arith.divf %147, %148 : vector<16x32xf32>
    %150 = vector.extract_strided_slice %120 {offsets = [0, 0], sizes = [16, 32], strides = [1, 1]} : vector<64x32xf32> to vector<16x32xf32>
    %151 = vector.extract_strided_slice %97 {offsets = [2, 0, 0], sizes = [1, 32, 32], strides = [1, 1, 1]} : vector<4x32x32xf32> to vector<1x32x32xf32>
    %152 = vector.shape_cast %151 : vector<1x32x32xf32> to vector<32x32xf32>
    %cst_114 = arith.constant dense<0.000000e+00> : vector<16x32xf32>
    %153 = tpu.matmul %128, %152, %cst_114 {dimension_numbers = #tpu.dot_dimension_numbers<[1], [0], [0], [1], [0, 0, 1, 1], [], []>} : vector<16x32xf32>, vector<32x32xf32>, vector<16x32xf32> -> vector<16x32xf32>
    %154 = arith.addf %150, %153 : vector<16x32xf32>
    %155 = math.tanh %154 : vector<16x32xf32>
    %156 = vector.extract_strided_slice %127 {offsets = [0, 0], sizes = [16, 32], strides = [1, 1]} : vector<64x32xf32> to vector<16x32xf32>
    %157 = vector.extract_strided_slice %97 {offsets = [3, 0, 0], sizes = [1, 32, 32], strides = [1, 1, 1]} : vector<4x32x32xf32> to vector<1x32x32xf32>
    %158 = vector.shape_cast %157 : vector<1x32x32xf32> to vector<32x32xf32>
    %cst_115 = arith.constant dense<0.000000e+00> : vector<16x32xf32>
    %159 = tpu.matmul %128, %158, %cst_115 {dimension_numbers = #tpu.dot_dimension_numbers<[1], [0], [0], [1], [0, 0, 1, 1], [], []>} : vector<16x32xf32>, vector<32x32xf32>, vector<16x32xf32> -> vector<16x32xf32>
    %160 = arith.addf %156, %159 : vector<16x32xf32>
    %161 = arith.negf %160 : vector<16x32xf32>
    %162 = math.exp %161 : vector<16x32xf32>
    %cst_116 = arith.constant 1.000000e+00 : f32
    %163 = vector.broadcast %cst_116 : f32 to vector<16x32xf32>
    %164 = arith.addf %163, %162 : vector<16x32xf32>
    %165 = arith.divf %163, %164 : vector<16x32xf32>
    %166 = arith.mulf %149, %129 : vector<16x32xf32>
    %167 = arith.mulf %139, %155 : vector<16x32xf32>
    %168 = arith.addf %166, %167 : vector<16x32xf32>
    %169 = math.tanh %168 : vector<16x32xf32>
    %170 = arith.mulf %165, %169 : vector<16x32xf32>
    %171 = vector.extract_strided_slice %106 {offsets = [16, 0], sizes = [16, 32], strides = [1, 1]} : vector<64x32xf32> to vector<16x32xf32>
    %172 = vector.extract_strided_slice %97 {offsets = [0, 0, 0], sizes = [1, 32, 32], strides = [1, 1, 1]} : vector<4x32x32xf32> to vector<1x32x32xf32>
    %173 = vector.shape_cast %172 : vector<1x32x32xf32> to vector<32x32xf32>
    %cst_117 = arith.constant dense<0.000000e+00> : vector<16x32xf32>
    %174 = tpu.matmul %170, %173, %cst_117 {dimension_numbers = #tpu.dot_dimension_numbers<[1], [0], [0], [1], [0, 0, 1, 1], [], []>} : vector<16x32xf32>, vector<32x32xf32>, vector<16x32xf32> -> vector<16x32xf32>
    %175 = arith.addf %171, %174 : vector<16x32xf32>
    %176 = arith.negf %175 : vector<16x32xf32>
    %177 = math.exp %176 : vector<16x32xf32>
    %cst_118 = arith.constant 1.000000e+00 : f32
    %178 = vector.broadcast %cst_118 : f32 to vector<16x32xf32>
    %179 = arith.addf %178, %177 : vector<16x32xf32>
    %180 = arith.divf %178, %179 : vector<16x32xf32>
    %181 = vector.extract_strided_slice %113 {offsets = [16, 0], sizes = [16, 32], strides = [1, 1]} : vector<64x32xf32> to vector<16x32xf32>
    %182 = vector.extract_strided_slice %97 {offsets = [1, 0, 0], sizes = [1, 32, 32], strides = [1, 1, 1]} : vector<4x32x32xf32> to vector<1x32x32xf32>
    %183 = vector.shape_cast %182 : vector<1x32x32xf32> to vector<32x32xf32>
    %cst_119 = arith.constant dense<0.000000e+00> : vector<16x32xf32>
    %184 = tpu.matmul %170, %183, %cst_119 {dimension_numbers = #tpu.dot_dimension_numbers<[1], [0], [0], [1], [0, 0, 1, 1], [], []>} : vector<16x32xf32>, vector<32x32xf32>, vector<16x32xf32> -> vector<16x32xf32>
    %185 = arith.addf %181, %184 : vector<16x32xf32>
    %186 = arith.negf %185 : vector<16x32xf32>
    %187 = math.exp %186 : vector<16x32xf32>
    %cst_120 = arith.constant 1.000000e+00 : f32
    %188 = vector.broadcast %cst_120 : f32 to vector<16x32xf32>
    %189 = arith.addf %188, %187 : vector<16x32xf32>
    %190 = arith.divf %188, %189 : vector<16x32xf32>
    %191 = vector.extract_strided_slice %120 {offsets = [16, 0], sizes = [16, 32], strides = [1, 1]} : vector<64x32xf32> to vector<16x32xf32>
    %192 = vector.extract_strided_slice %97 {offsets = [2, 0, 0], sizes = [1, 32, 32], strides = [1, 1, 1]} : vector<4x32x32xf32> to vector<1x32x32xf32>
    %193 = vector.shape_cast %192 : vector<1x32x32xf32> to vector<32x32xf32>
    %cst_121 = arith.constant dense<0.000000e+00> : vector<16x32xf32>
    %194 = tpu.matmul %170, %193, %cst_121 {dimension_numbers = #tpu.dot_dimension_numbers<[1], [0], [0], [1], [0, 0, 1, 1], [], []>} : vector<16x32xf32>, vector<32x32xf32>, vector<16x32xf32> -> vector<16x32xf32>
    %195 = arith.addf %191, %194 : vector<16x32xf32>
    %196 = math.tanh %195 : vector<16x32xf32>
    %197 = vector.extract_strided_slice %127 {offsets = [16, 0], sizes = [16, 32], strides = [1, 1]} : vector<64x32xf32> to vector<16x32xf32>
    %198 = vector.extract_strided_slice %97 {offsets = [3, 0, 0], sizes = [1, 32, 32], strides = [1, 1, 1]} : vector<4x32x32xf32> to vector<1x32x32xf32>
    %199 = vector.shape_cast %198 : vector<1x32x32xf32> to vector<32x32xf32>
    %cst_122 = arith.constant dense<0.000000e+00> : vector<16x32xf32>
    %200 = tpu.matmul %170, %199, %cst_122 {dimension_numbers = #tpu.dot_dimension_numbers<[1], [0], [0], [1], [0, 0, 1, 1], [], []>} : vector<16x32xf32>, vector<32x32xf32>, vector<16x32xf32> -> vector<16x32xf32>
    %201 = arith.addf %197, %200 : vector<16x32xf32>
    %202 = arith.negf %201 : vector<16x32xf32>
    %203 = math.exp %202 : vector<16x32xf32>
    %cst_123 = arith.constant 1.000000e+00 : f32
    %204 = vector.broadcast %cst_123 : f32 to vector<16x32xf32>
    %205 = arith.addf %204, %203 : vector<16x32xf32>
    %206 = arith.divf %204, %205 : vector<16x32xf32>
    %207 = arith.mulf %190, %168 : vector<16x32xf32>
    %208 = arith.mulf %180, %196 : vector<16x32xf32>
    %209 = arith.addf %207, %208 : vector<16x32xf32>
    %210 = math.tanh %209 : vector<16x32xf32>
    %211 = arith.mulf %206, %210 : vector<16x32xf32>
    %212 = vector.extract_strided_slice %106 {offsets = [32, 0], sizes = [16, 32], strides = [1, 1]} : vector<64x32xf32> to vector<16x32xf32>
    %213 = vector.extract_strided_slice %97 {offsets = [0, 0, 0], sizes = [1, 32, 32], strides = [1, 1, 1]} : vector<4x32x32xf32> to vector<1x32x32xf32>
    %214 = vector.shape_cast %213 : vector<1x32x32xf32> to vector<32x32xf32>
    %cst_124 = arith.constant dense<0.000000e+00> : vector<16x32xf32>
    %215 = tpu.matmul %211, %214, %cst_124 {dimension_numbers = #tpu.dot_dimension_numbers<[1], [0], [0], [1], [0, 0, 1, 1], [], []>} : vector<16x32xf32>, vector<32x32xf32>, vector<16x32xf32> -> vector<16x32xf32>
    %216 = arith.addf %212, %215 : vector<16x32xf32>
    %217 = arith.negf %216 : vector<16x32xf32>
    %218 = math.exp %217 : vector<16x32xf32>
    %cst_125 = arith.constant 1.000000e+00 : f32
    %219 = vector.broadcast %cst_125 : f32 to vector<16x32xf32>
    %220 = arith.addf %219, %218 : vector<16x32xf32>
    %221 = arith.divf %219, %220 : vector<16x32xf32>
    %222 = vector.extract_strided_slice %113 {offsets = [32, 0], sizes = [16, 32], strides = [1, 1]} : vector<64x32xf32> to vector<16x32xf32>
    %223 = vector.extract_strided_slice %97 {offsets = [1, 0, 0], sizes = [1, 32, 32], strides = [1, 1, 1]} : vector<4x32x32xf32> to vector<1x32x32xf32>
    %224 = vector.shape_cast %223 : vector<1x32x32xf32> to vector<32x32xf32>
    %cst_126 = arith.constant dense<0.000000e+00> : vector<16x32xf32>
    %225 = tpu.matmul %211, %224, %cst_126 {dimension_numbers = #tpu.dot_dimension_numbers<[1], [0], [0], [1], [0, 0, 1, 1], [], []>} : vector<16x32xf32>, vector<32x32xf32>, vector<16x32xf32> -> vector<16x32xf32>
    %226 = arith.addf %222, %225 : vector<16x32xf32>
    %227 = arith.negf %226 : vector<16x32xf32>
    %228 = math.exp %227 : vector<16x32xf32>
    %cst_127 = arith.constant 1.000000e+00 : f32
    %229 = vector.broadcast %cst_127 : f32 to vector<16x32xf32>
    %230 = arith.addf %229, %228 : vector<16x32xf32>
    %231 = arith.divf %229, %230 : vector<16x32xf32>
    %232 = vector.extract_strided_slice %120 {offsets = [32, 0], sizes = [16, 32], strides = [1, 1]} : vector<64x32xf32> to vector<16x32xf32>
    %233 = vector.extract_strided_slice %97 {offsets = [2, 0, 0], sizes = [1, 32, 32], strides = [1, 1, 1]} : vector<4x32x32xf32> to vector<1x32x32xf32>
    %234 = vector.shape_cast %233 : vector<1x32x32xf32> to vector<32x32xf32>
    %cst_128 = arith.constant dense<0.000000e+00> : vector<16x32xf32>
    %235 = tpu.matmul %211, %234, %cst_128 {dimension_numbers = #tpu.dot_dimension_numbers<[1], [0], [0], [1], [0, 0, 1, 1], [], []>} : vector<16x32xf32>, vector<32x32xf32>, vector<16x32xf32> -> vector<16x32xf32>
    %236 = arith.addf %232, %235 : vector<16x32xf32>
    %237 = math.tanh %236 : vector<16x32xf32>
    %238 = vector.extract_strided_slice %127 {offsets = [32, 0], sizes = [16, 32], strides = [1, 1]} : vector<64x32xf32> to vector<16x32xf32>
    %239 = vector.extract_strided_slice %97 {offsets = [3, 0, 0], sizes = [1, 32, 32], strides = [1, 1, 1]} : vector<4x32x32xf32> to vector<1x32x32xf32>
    %240 = vector.shape_cast %239 : vector<1x32x32xf32> to vector<32x32xf32>
    %cst_129 = arith.constant dense<0.000000e+00> : vector<16x32xf32>
    %241 = tpu.matmul %211, %240, %cst_129 {dimension_numbers = #tpu.dot_dimension_numbers<[1], [0], [0], [1], [0, 0, 1, 1], [], []>} : vector<16x32xf32>, vector<32x32xf32>, vector<16x32xf32> -> vector<16x32xf32>
    %242 = arith.addf %238, %241 : vector<16x32xf32>
    %243 = arith.negf %242 : vector<16x32xf32>
    %244 = math.exp %243 : vector<16x32xf32>
    %cst_130 = arith.constant 1.000000e+00 : f32
    %245 = vector.broadcast %cst_130 : f32 to vector<16x32xf32>
    %246 = arith.addf %245, %244 : vector<16x32xf32>
    %247 = arith.divf %245, %246 : vector<16x32xf32>
    %248 = arith.mulf %231, %209 : vector<16x32xf32>
    %249 = arith.mulf %221, %237 : vector<16x32xf32>
    %250 = arith.addf %248, %249 : vector<16x32xf32>
    %251 = math.tanh %250 : vector<16x32xf32>
    %252 = arith.mulf %247, %251 : vector<16x32xf32>
    %253 = vector.extract_strided_slice %106 {offsets = [48, 0], sizes = [16, 32], strides = [1, 1]} : vector<64x32xf32> to vector<16x32xf32>
    %254 = vector.extract_strided_slice %97 {offsets = [0, 0, 0], sizes = [1, 32, 32], strides = [1, 1, 1]} : vector<4x32x32xf32> to vector<1x32x32xf32>
    %255 = vector.shape_cast %254 : vector<1x32x32xf32> to vector<32x32xf32>
    %cst_131 = arith.constant dense<0.000000e+00> : vector<16x32xf32>
    %256 = tpu.matmul %252, %255, %cst_131 {dimension_numbers = #tpu.dot_dimension_numbers<[1], [0], [0], [1], [0, 0, 1, 1], [], []>} : vector<16x32xf32>, vector<32x32xf32>, vector<16x32xf32> -> vector<16x32xf32>
    %257 = arith.addf %253, %256 : vector<16x32xf32>
    %258 = arith.negf %257 : vector<16x32xf32>
    %259 = math.exp %258 : vector<16x32xf32>
    %cst_132 = arith.constant 1.000000e+00 : f32
    %260 = vector.broadcast %cst_132 : f32 to vector<16x32xf32>
    %261 = arith.addf %260, %259 : vector<16x32xf32>
    %262 = arith.divf %260, %261 : vector<16x32xf32>
    %263 = vector.extract_strided_slice %113 {offsets = [48, 0], sizes = [16, 32], strides = [1, 1]} : vector<64x32xf32> to vector<16x32xf32>
    %264 = vector.extract_strided_slice %97 {offsets = [1, 0, 0], sizes = [1, 32, 32], strides = [1, 1, 1]} : vector<4x32x32xf32> to vector<1x32x32xf32>
    %265 = vector.shape_cast %264 : vector<1x32x32xf32> to vector<32x32xf32>
    %cst_133 = arith.constant dense<0.000000e+00> : vector<16x32xf32>
    %266 = tpu.matmul %252, %265, %cst_133 {dimension_numbers = #tpu.dot_dimension_numbers<[1], [0], [0], [1], [0, 0, 1, 1], [], []>} : vector<16x32xf32>, vector<32x32xf32>, vector<16x32xf32> -> vector<16x32xf32>
    %267 = arith.addf %263, %266 : vector<16x32xf32>
    %268 = arith.negf %267 : vector<16x32xf32>
    %269 = math.exp %268 : vector<16x32xf32>
    %cst_134 = arith.constant 1.000000e+00 : f32
    %270 = vector.broadcast %cst_134 : f32 to vector<16x32xf32>
    %271 = arith.addf %270, %269 : vector<16x32xf32>
    %272 = arith.divf %270, %271 : vector<16x32xf32>
    %273 = vector.extract_strided_slice %120 {offsets = [48, 0], sizes = [16, 32], strides = [1, 1]} : vector<64x32xf32> to vector<16x32xf32>
    %274 = vector.extract_strided_slice %97 {offsets = [2, 0, 0], sizes = [1, 32, 32], strides = [1, 1, 1]} : vector<4x32x32xf32> to vector<1x32x32xf32>
    %275 = vector.shape_cast %274 : vector<1x32x32xf32> to vector<32x32xf32>
    %cst_135 = arith.constant dense<0.000000e+00> : vector<16x32xf32>
    %276 = tpu.matmul %252, %275, %cst_135 {dimension_numbers = #tpu.dot_dimension_numbers<[1], [0], [0], [1], [0, 0, 1, 1], [], []>} : vector<16x32xf32>, vector<32x32xf32>, vector<16x32xf32> -> vector<16x32xf32>
    %277 = arith.addf %273, %276 : vector<16x32xf32>
    %278 = math.tanh %277 : vector<16x32xf32>
    %279 = vector.extract_strided_slice %127 {offsets = [48, 0], sizes = [16, 32], strides = [1, 1]} : vector<64x32xf32> to vector<16x32xf32>
    %280 = vector.extract_strided_slice %97 {offsets = [3, 0, 0], sizes = [1, 32, 32], strides = [1, 1, 1]} : vector<4x32x32xf32> to vector<1x32x32xf32>
    %281 = vector.shape_cast %280 : vector<1x32x32xf32> to vector<32x32xf32>
    %cst_136 = arith.constant dense<0.000000e+00> : vector<16x32xf32>
    %282 = tpu.matmul %252, %281, %cst_136 {dimension_numbers = #tpu.dot_dimension_numbers<[1], [0], [0], [1], [0, 0, 1, 1], [], []>} : vector<16x32xf32>, vector<32x32xf32>, vector<16x32xf32> -> vector<16x32xf32>
    %283 = arith.addf %279, %282 : vector<16x32xf32>
    %284 = arith.negf %283 : vector<16x32xf32>
    %285 = math.exp %284 : vector<16x32xf32>
    %cst_137 = arith.constant 1.000000e+00 : f32
    %286 = vector.broadcast %cst_137 : f32 to vector<16x32xf32>
    %287 = arith.addf %286, %285 : vector<16x32xf32>
    %288 = arith.divf %286, %287 : vector<16x32xf32>
    %289 = arith.mulf %272, %250 : vector<16x32xf32>
    %290 = arith.mulf %262, %278 : vector<16x32xf32>
    %291 = arith.addf %289, %290 : vector<16x32xf32>
    %292 = math.tanh %291 : vector<16x32xf32>
    %293 = arith.mulf %288, %292 : vector<16x32xf32>
    %c0_138 = arith.constant 0 : index
    %c0_139 = arith.constant 0 : index
    %294 = vector.load %arg13[%c0_138, %c0_139] : memref<1x32xf32, #tpu.memory_space<vmem>>, vector<1x32xf32>
    %c0_140 = arith.constant 0 : index
    %295 = memref.load %arg0[%c0_140] : memref<1xf32, #tpu.memory_space<smem>>
    %296 = math.tanh %7 : vector<16x32xf32>
    %297 = vector.broadcast %294 : vector<1x32xf32> to vector<16x32xf32>
    %298 = arith.mulf %296, %297 : vector<16x32xf32>
    %cst_141 = arith.constant dense<0.000000e+00> : vector<16xf32>
    %299 = vector.multi_reduction <add>, %298, %cst_141 [1] : vector<16x32xf32> to vector<16xf32>
    %300 = vector.shape_cast %299 : vector<16xf32> to vector<16x1xf32>
    %301 = vector.broadcast %295 : f32 to vector<16x1xf32>
    %302 = arith.addf %300, %301 : vector<16x1xf32>
    %303 = math.tanh %170 : vector<16x32xf32>
    %304 = vector.broadcast %294 : vector<1x32xf32> to vector<16x32xf32>
    %305 = arith.mulf %303, %304 : vector<16x32xf32>
    %cst_142 = arith.constant dense<0.000000e+00> : vector<16xf32>
    %306 = vector.multi_reduction <add>, %305, %cst_142 [1] : vector<16x32xf32> to vector<16xf32>
    %307 = vector.shape_cast %306 : vector<16xf32> to vector<16x1xf32>
    %308 = vector.broadcast %295 : f32 to vector<16x1xf32>
    %309 = arith.addf %307, %308 : vector<16x1xf32>
    %310 = math.tanh %211 : vector<16x32xf32>
    %311 = vector.broadcast %294 : vector<1x32xf32> to vector<16x32xf32>
    %312 = arith.mulf %310, %311 : vector<16x32xf32>
    %cst_143 = arith.constant dense<0.000000e+00> : vector<16xf32>
    %313 = vector.multi_reduction <add>, %312, %cst_143 [1] : vector<16x32xf32> to vector<16xf32>
    %314 = vector.shape_cast %313 : vector<16xf32> to vector<16x1xf32>
    %315 = vector.broadcast %295 : f32 to vector<16x1xf32>
    %316 = arith.addf %314, %315 : vector<16x1xf32>
    %317 = math.tanh %252 : vector<16x32xf32>
    %318 = vector.broadcast %294 : vector<1x32xf32> to vector<16x32xf32>
    %319 = arith.mulf %317, %318 : vector<16x32xf32>
    %cst_144 = arith.constant dense<0.000000e+00> : vector<16xf32>
    %320 = vector.multi_reduction <add>, %319, %cst_144 [1] : vector<16x32xf32> to vector<16xf32>
    %321 = vector.shape_cast %320 : vector<16xf32> to vector<16x1xf32>
    %322 = vector.broadcast %295 : f32 to vector<16x1xf32>
    %323 = arith.addf %321, %322 : vector<16x1xf32>
    %324 = math.tanh %293 : vector<16x32xf32>
    %325 = vector.broadcast %294 : vector<1x32xf32> to vector<16x32xf32>
    %326 = arith.mulf %324, %325 : vector<16x32xf32>
    %cst_145 = arith.constant dense<0.000000e+00> : vector<16xf32>
    %327 = vector.multi_reduction <add>, %326, %cst_145 [1] : vector<16x32xf32> to vector<16xf32>
    %328 = vector.shape_cast %327 : vector<16xf32> to vector<16x1xf32>
    %329 = vector.broadcast %295 : f32 to vector<16x1xf32>
    %330 = arith.addf %328, %329 : vector<16x1xf32>
    %331 = arith.maximumf %302, %309 : vector<16x1xf32>
    %332 = arith.maximumf %331, %316 : vector<16x1xf32>
    %333 = arith.maximumf %332, %323 : vector<16x1xf32>
    %334 = arith.maximumf %333, %330 : vector<16x1xf32>
    %335 = arith.subf %302, %334 : vector<16x1xf32>
    %336 = math.exp %335 : vector<16x1xf32>
    %337 = arith.subf %309, %334 : vector<16x1xf32>
    %338 = math.exp %337 : vector<16x1xf32>
    %339 = arith.subf %316, %334 : vector<16x1xf32>
    %340 = math.exp %339 : vector<16x1xf32>
    %341 = arith.subf %323, %334 : vector<16x1xf32>
    %342 = math.exp %341 : vector<16x1xf32>
    %343 = arith.subf %330, %334 : vector<16x1xf32>
    %344 = math.exp %343 : vector<16x1xf32>
    %345 = arith.addf %336, %338 : vector<16x1xf32>
    %346 = arith.addf %345, %340 : vector<16x1xf32>
    %347 = arith.addf %346, %342 : vector<16x1xf32>
    %348 = arith.addf %347, %344 : vector<16x1xf32>
    %349 = vector.broadcast %336 : vector<16x1xf32> to vector<16x32xf32>
    %350 = arith.mulf %7, %349 : vector<16x32xf32>
    %351 = vector.broadcast %338 : vector<16x1xf32> to vector<16x32xf32>
    %352 = arith.mulf %170, %351 : vector<16x32xf32>
    %353 = arith.addf %350, %352 : vector<16x32xf32>
    %354 = vector.broadcast %340 : vector<16x1xf32> to vector<16x32xf32>
    %355 = arith.mulf %211, %354 : vector<16x32xf32>
    %356 = arith.addf %353, %355 : vector<16x32xf32>
    %357 = vector.broadcast %342 : vector<16x1xf32> to vector<16x32xf32>
    %358 = arith.mulf %252, %357 : vector<16x32xf32>
    %359 = arith.addf %356, %358 : vector<16x32xf32>
    %360 = vector.broadcast %344 : vector<16x1xf32> to vector<16x32xf32>
    %361 = arith.mulf %293, %360 : vector<16x32xf32>
    %362 = arith.addf %359, %361 : vector<16x32xf32>
    %363 = vector.broadcast %348 : vector<16x1xf32> to vector<16x32xf32>
    %364 = arith.divf %362, %363 : vector<16x32xf32>
    %c0_146 = arith.constant 0 : index
    %c0_147 = arith.constant 0 : index
    %365 = vector.load %arg14[%c0_146, %c0_147] : memref<16x32xf32, #tpu.memory_space<vmem>>, vector<16x32xf32>
    tpu.vector_store %arg14[%c0_146, %c0_147], %364 {strides = array<i32>} : memref<16x32xf32, #tpu.memory_space<vmem>>, vector<16x32xf32>,
    return
  }
}

</mosaic_0001>

<bundles_post_ra>
// kernel: temgnn_forward.1
= control target key start
LH: loop header
LB: loop body
LE: loop exit
PB: predicated region body
PF: predicated region fallthrough
CT: control target
= control target key end

     0   :  { %vm61_vm0 = vcmask 179200   ;;  %vm68_vm1 = vcmask 1045504   ;;  %s5711_s0 = inlined_call_operand.<no memory space> [shape: f32[1], index: 0, kind: input, shape index: {}]   ;;  %s5712_s1 = inlined_call_operand.vmem [shape: f32[16,22], index: 1, kind: input, shape index: {}]   ;;  %s5713_s2 = inlined_call_operand.vmem [shape: f32[4,16,21], index: 2, kind: input, shape index: {}]   ;;  %s5714_s3 = inlined_call_operand.vmem [shape: f32[4,16,16], index: 3, kind: input, shape index: {}]   ;;  %s5715_s4 = inlined_call_operand.vmem [shape: f32[22,32], index: 4, kind: input, shape index: {}]   ;;  %s5716_s5 = inlined_call_operand.vmem [shape: f32[1,32], index: 5, kind: input, shape index: {}]   ;;  %s5717_s6 = inlined_call_operand.vmem [shape: f32[4,21,32], index: 6, kind: input, shape index: {}]   ;;  %s5718_s7 = inlined_call_operand.vmem [shape: f32[4,1,32], index: 7, kind: input, shape index: {}]   ;;  %s5719_s8 = inlined_call_operand.vmem [shape: f32[4,32,24], index: 8, kind: input, shape index: {}]   ;;  %s5720_s9 = inlined_call_operand.vmem [shape: f32[4,1,24], index: 9, kind: input, shape index: {}]   ;;  %s5721_s10 = inlined_call_operand.vmem [shape: f32[4,24,32], index: 10, kind: input, shape index: {}]   ;;  %s5722_s11 = inlined_call_operand.vmem [shape: f32[4,32,32], index: 11, kind: input, shape index: {}]   ;;  %s5723_s12 = inlined_call_operand.vmem [shape: f32[4,1,32], index: 12, kind: input, shape index: {}]   ;;  %s5724_s13 = inlined_call_operand.vmem [shape: f32[1,32], index: 13, kind: input, shape index: {}]   ;;  %s5725_s14 = inlined_call_operand.hbm [shape: f32[16,32], index: 14, kind: output, shape index: {}]  }
   0x1   :  { %v51_v0 = vld [vmem:[%s5715_s4] sm:$0xff]  ;;  %v52_v1 = vld [vmem:[%s5715_s4 + $0x8] sm:$0xff]  ;;  %v53_v4 = vld [vmem:[%s5715_s4 + $0x10] sm:$0x3f] }
   0x2   :  { %v4450_v2 = vpack.c.bf16 %v52_v1, %v51_v0  ;;  %v49_v3 = vld [vmem:[%s5712_s1] sm:$0xff]  ;;  %v152_v6 = vld [vmem:[%s5713_s2 + $0x8] sm:$0xff] }
   0x3   :  { %4063 = vmatprep.mubr.msk.f32.mxu0 %vm61_vm0, %v49_v3  ;;  %v151_v5 = vld [vmem:[%s5713_s2] sm:$0xff] }
   0x4   :  { %4451 = vmatprep.subr.bf16.mxu0 %v4450_v2 }
   0x5   :  { %20 = vsyncpa [#allocation4], 0  ;;  %4453 = vmatpush3.bf16.msra.mxu0 %v4450_v2  ;;  %v4454_v7 = vpack.c.bf16 %v152_v6, %v151_v5  ;;  %v50_v8 = vld [vmem:[%s5712_s1 + $0x8] sm:$0xff]  ;;  %v149_v9 = vld [vmem:[%s5714_s3] sm:$0xff]  ;;  %vm153_vm2 = vcmask 130048   ;;  %vm252_vm3 = vcmask 1044480  }
   0x6   :  { %4061 = vmatprep.subr.msk.mxu0 %vm68_vm1, %v53_v4  ;;  %v5052_v10 = vld [vmem:[%s5714_s3 + $0x8] sm:$0xff]  ;;  %v235_v11 = vld [vmem:[%s5717_s6] sm:$0xff]  ;;  %v237_v14 = vld [vmem:[%s5717_s6 + $0x10] sm:$0x1f]  ;;  %vm245_vm4 = vcmask 171008   ;;  %vm419_vm5 = vcmask 261120  }
   0x7   :  { %v236_v12 = vld [vmem:[%s5717_s6 + $0x8] sm:$0xff]  ;;  %v3681_v15 = vld [vmem:[%s5713_s2 + $0x10] sm:$0xff]  ;;  %v3682_v16 = vld [vmem:[%s5713_s2 + $0x18] sm:$0xff]  ;;  %vm1601_vm6 = vcmask 195584  }
   0x8   :  { %v4458_v13 = vpack.c.bf16 %v236_v12, %v235_v11  ;;  %v4474_v17 = vpack.c.bf16 %v3682_v16, %v3681_v15  ;;  %v3664_v18 = vld [vmem:[%s5716_s5] ss:$0 sm:$0xff]  ;;  %v5088_v27 = vld [vmem:[%s5714_s3 + $0x10] sm:$0xff]  ;;  %v5099_v28 = vld [vmem:[%s5714_s3 + $0x18] sm:$0xff] }
   0x9   :  { %4062 = vmatpush3.msk.msra.mxu0 %vm68_vm1, %v53_v4  ;;  %v5106_v29 = vld [vmem:[%s5724_s13] ss:$0 sm:$0xff]  ;;  %v3685_v36 = vld [vmem:[%s5717_s6 + $0x18] sm:$0xff]  ;;  %v3687_v39 = vld [vmem:[%s5717_s6 + $0x28] sm:$0x1f] }
   0xa   :  { %4064 = vmatmul.mubr.msk.f32.vlgmr.msra.gmra.mrb[0].mxu0 %vm61_vm0, %v50_v8  ;;  %4455 = vmatprep.subr.bf16.mxu0 %v4454_v7  ;;  %v3686_v37 = vld [vmem:[%s5717_s6 + $0x20] sm:$0xff]  ;;  %v409_v47 = vld [vmem:[%s5719_s8 + $0x8] sm:$0xff]  ;;  %v410_v53 = vld [vmem:[%s5719_s8 + $0x10] sm:$0xff] }
   0xb   :  { %4457 = vmatpush3.bf16.msra.mxu0 %v4454_v7  ;;  %4070 = vmatprep.mubr.msk.f32.mxu0 %vm153_vm2, %v149_v9  ;;  %v4478_v38 = vpack.c.bf16 %v3686_v37, %v3685_v36  ;;  %v3670_v40 = vld [vmem:[%s5718_s7] ss:$0 sm:$0xff]  ;;  %v411_v54 = vld [vmem:[%s5719_s8 + $0x18] sm:$0xff]  ;;  %v3696_v57 = vld [vmem:[%s5719_s8 + $0x28] sm:$0xff] }
   0xc   :  { %4459 = vmatprep.subr.bf16.mxu1 %v4458_v13  ;;  %v408_v46 = vld [vmem:[%s5719_s8] sm:$0xff]  ;;  %v4470_v55 = vpack.c.bf16 %v411_v54, %v410_v53  ;;  %v3706_v2 = vld [vmem:[%s5713_s2 + $0x28] sm:$0xff]  ;;  %v3698_v11 = vld [vmem:[%s5719_s8 + $0x38] sm:$0xff] }
   0xd   :  { %4461 = vmatpush3.bf16.msra.mxu1 %v4458_v13  ;;  %v4466_v52 = vpack.c.bf16 %v409_v47, %v408_v46  ;;  %v3695_v56 = vld [vmem:[%s5719_s8 + $0x20] sm:$0xff]  ;;  %v3709_v13 = vld [vmem:[%s5717_s6 + $0x30] sm:$0xff] }
   0xe   :  { %4071 = vmatmul.mubr.msk.f32.vlgmr.msra.gmra.mrb[2].mxu0 %vm153_vm2, %v5052_v10  ;;  %4077 = vmatprep.subr.msk.mxu1 %vm252_vm3, %v237_v14  ;;  %v4486_v58 = vpack.c.bf16 %v3696_v57, %v3695_v56  ;;  %v3689_v59 = vld [vmem:[%s5718_s7 + $0x1] ss:$0 sm:$0xff]  ;;  %v3713_v36 = vld [vmem:[%s5718_s7 + $0x2] ss:$0 sm:$0xff]  ;;  %v3727_v47 = vld [vmem:[%s5714_s3 + $0x30] sm:$0xff] }
   0xf   :  { %4086 = vmatprep.mubr.msk.f32.mxu0 %vm153_vm2, %v149_v9  ;;  %v3705_v1 = vld [vmem:[%s5713_s2 + $0x20] sm:$0xff]  ;;  %v3704_v9 = vld [vmem:[%s5714_s3 + $0x28] sm:$0xff] }
  0x10   :  { %v4494_v7 = vpack.c.bf16 %v3706_v2, %v3705_v1  ;;  %v3703_v8 = vld [vmem:[%s5714_s3 + $0x20] sm:$0xff] }
  0x11   :  { %4078 = vmatpush3.msk.msra.mxu1 %vm252_vm3, %v237_v14  ;;  %v3710_v14 = vld [vmem:[%s5717_s6 + $0x38] sm:$0xff]  ;;  %v3711_v16 = vld [vmem:[%s5717_s6 + $0x40] sm:$0x1f] }
  0x12   :  { %4475 = vmatprep.subr.bf16.mxu1 %v4474_v17  ;;  %v4498_v15 = vpack.c.bf16 %v3710_v14, %v3709_v13  ;;  %v3743_v57 = vld [vmem:[%s5719_s8 + $0x60] sm:$0xff]  ;;  %v1565_v14 = vld [vmem:[%s5721_s10 + $0x10] sm:$0xff] }
  0x13   :  { %v3737_v1 = vld [vmem:[%s5718_s7 + $0x3] ss:$0 sm:$0xff] }
  0xdd   :  { %v4065_v19 = vpop.f32.mrb[0].mxu0 }
  0xde   :  { %v5077_v20 = vadd.f32 %v4065_v19, %v3664_v18  ;;  %v138_v21 = vpop.f32.mrb[1].mxu0 }
  0xdf   :  { %v5079_v22 = vadd.f32 %v3664_v18, %v138_v21 }
  0xe0   :  { %v148_v23 = vmax.f32 %v5077_v20, 0.0 }
  0xe1   :  { %v147_v24 = vmax.f32 %v5079_v22, 0.0  ;;  %v4072_v25 = vpop.f32.mrb[2].mxu0 }
  0xe2   :  { %4746 = vtanh.f32 %v148_v23  ;;  %v226_v26 = vpop.f32.mrb[3].mxu0 }
  0xe3   :  { %4748 = vtanh.f32 %v147_v24  ;;  %4079 = vmatprep.mubr.msk.f32.mxu1 %vm245_vm4, %v226_v26 }
  0xe4   :  { %4080 = vmatmul.mubr.msk.f32.vlgmr.msra.gmra.mrb[0].mxu1 %vm245_vm4, %v4072_v25 }
  0xe5   :  { %4477 = vmatpush3.bf16.msra.mxu1 %v4474_v17  ;;  %4104 = vmatprep.mubr.msk.f32.mxu1 %vm153_vm2, %v5088_v27 }
  0xe6   :  { %4479 = vmatprep.subr.bf16.mxu1 %v4478_v38 }
  0xe8   :  { %4105 = vmatmul.mubr.msk.f32.vlgmr.msra.gmra.mrb[2].mxu1 %vm153_vm2, %v5099_v28 }
  0xe9   :  { %4481 = vmatpush3.bf16.msra.mxu1 %v4478_v38 }
  0xea   :  { %4111 = vmatprep.subr.msk.mxu1 %vm252_vm3, %v3687_v39 }
  0xec   :  { %v4747_v30 = vpop.eup %4746 }
  0xed   :  { %v4749_v31 = vpop.eup %4748  ;;  %v3520_v32 = vmul.f32 %v4747_v30, %v5106_v29  ;;  %4112 = vmatpush3.msk.msra.mxu1 %vm252_vm3, %v3687_v39  ;;  %v3721_v30 = vld [vmem:[%s5719_s8 + $0x50] sm:$0xff] }
  0xee   :  { %v3519_v34 = vmul.f32 %v4749_v31, %v5106_v29  ;;  %4487 = vmatprep.subr.bf16.mxu1 %v4486_v58 }
  0xef   :  { %v3524_v33 = vsel %vm419_vm5, %v3520_v32, 0.0  ;;  %v3722_v32 = vld [vmem:[%s5719_s8 + $0x58] sm:$0xff] }
  0xf0   :  { %3525 = vadd.xlane.f32.xlu0 %v3524_v33  ;;  %v3521_v35 = vsel %vm419_vm5, %v3519_v34, 0.0  ;;  %v4510_v33 = vpack.c.bf16 %v3722_v32, %v3721_v30  ;;  %v1569_v30 = vld [vmem:[%s5721_s10 + $0x30] sm:$0xff] }
  0xf4   :  { %3522 = vadd.xlane.f32.xlu0 %v3521_v35 }
 0x1b7   :  { %v4081_v41 = vpop.f32.mrb[0].mxu1 }
 0x1b8   :  { %v328_v42 = vadd.f32 %v4081_v41, %v3670_v40  ;;  %v322_v43 = vpop.f32.mrb[1].mxu1 }
 0x1b9   :  { %v323_v44 = vadd.f32 %v3670_v40, %v322_v43  ;;  %v3730_v43 = vld [vmem:[%s5713_s2 + $0x38] sm:$0xff] }
 0x1ba   :  { %v332_v45 = vmax.f32 %v328_v42, 0.0  ;;  %v3729_v42 = vld [vmem:[%s5713_s2 + $0x30] sm:$0xff] }
 0x1bb   :  { %v331_v48 = vmax.f32 %v323_v44, 0.0  ;;  %v4106_v49 = vpop.f32.mrb[2].mxu1  ;;  %v4514_v46 = vpack.c.bf16 %v3730_v43, %v3729_v42  ;;  %v1576_v42 = vld [vmem:[%s5722_s11 + $0x8] sm:$0xff]  ;;  %v1579_v43 = vld [vmem:[%s5722_s11 + $0x20] sm:$0xff] }
 0x1bc   :  { %v579_v50 = vpop.f32.mrb[3].mxu1 }
 0x1bd   :  { %v4462_v51 = vpack.c.bf16 %v332_v45, %v331_v48  ;;  %4113 = vmatprep.mubr.msk.f32.mxu1 %vm245_vm4, %v579_v50  ;;  %v3728_v48 = vld [vmem:[%s5714_s3 + $0x38] sm:$0xff]  ;;  %v3734_v50 = vld [vmem:[%s5717_s6 + $0x50] sm:$0xff] }
 0x1be   :  { %4114 = vmatmul.mubr.msk.f32.vlgmr.msra.gmra.mrb[4].mxu1 %vm245_vm4, %v4106_v49  ;;  %v3733_v49 = vld [vmem:[%s5717_s6 + $0x48] sm:$0xff] }
 0x1bf   :  { %4463 = vmatprep.subr.bf16.mxu0 %v4462_v51  ;;  %4489 = vmatpush3.bf16.msra.mxu1 %v4486_v58  ;;  %v3744_v58 = vld [vmem:[%s5719_s8 + $0x68] sm:$0xff] }
 0x1c0   :  { %4465 = vmatpush3.bf16.msra.mxu0 %v4462_v51  ;;  %v4518_v51 = vpack.c.bf16 %v3734_v50, %v3733_v49 }
 0x1c1   :  { %4467 = vmatprep.subr.bf16.mxu0 %v4466_v52 }
 0x1c3   :  { %4087 = vmatmul.mubr.msk.f32.vlgmr.msra.gmra.mrb[4].mxu0 %vm153_vm2, %v5052_v10  ;;  %v3697_v10 = vld [vmem:[%s5719_s8 + $0x30] sm:$0xff] }
 0x1c4   :  { %4469 = vmatpush3.bf16.msra.mxu0 %v4466_v52  ;;  %v4490_v12 = vpack.c.bf16 %v3698_v11, %v3697_v10  ;;  %v3735_v52 = vld [vmem:[%s5717_s6 + $0x58] sm:$0x1f] }
 0x1c5   :  { %4471 = vmatprep.subr.bf16.mxu0 %v4470_v55 }
 0x1c6   :  { %4491 = vmatprep.subr.bf16.mxu1 %v4490_v12 }
 0x1c7   :  { %4493 = vmatpush3.bf16.msra.mxu1 %v4490_v12  ;;  %v3676_v12 = vld [vmem:[%s5720_s9] ss:$0 sm:$0xff] }
 0x1c8   :  { %4473 = vmatpush3.bf16.msra.mxu0 %v4470_v55 }
 0x291   :  { %v4115_v60 = vpop.f32.mrb[4].mxu1 }
 0x292   :  { %v681_v61 = vadd.f32 %v4115_v60, %v3689_v59  ;;  %v675_v62 = vpop.f32.mrb[5].mxu1  ;;  %v4526_v60 = vpack.c.bf16 %v3744_v58, %v3743_v57  ;;  %v1583_v58 = vld [vmem:[%s5722_s11 + $0x40] sm:$0xff] }
 0x293   :  { %v676_v63 = vadd.f32 %v3689_v59, %v675_v62  ;;  %v3745_v59 = vld [vmem:[%s5719_s8 + $0x70] sm:$0xff] }
 0x294   :  { %v685_v0 = vmax.f32 %v681_v61, 0.0  ;;  %v3746_v61 = vld [vmem:[%s5719_s8 + $0x78] sm:$0xff] }
 0x295   :  { %v684_v3 = vmax.f32 %v676_v63, 0.0  ;;  %v4530_v62 = vpack.c.bf16 %v3746_v61, %v3745_v59  ;;  %v1584_v59 = vld [vmem:[%s5722_s11 + $0x48] sm:$0xff] }
 0x296   :  { %v4088_v4 = vpop.f32.mrb[4].mxu0  ;;  %v1588_v61 = vld [vmem:[%s5722_s11 + $0x68] sm:$0xff] }
 0x297   :  { %v4482_v5 = vpack.c.bf16 %v685_v0, %v684_v3  ;;  %v399_v6 = vpop.f32.mrb[5].mxu0 }
 0x298   :  { %4097 = vmatprep.mubr.msk.f32.mxu0 %vm419_vm5, %v399_v6 }
 0x299   :  { %4098 = vmatmul.mubr.msk.f32.vlgmr.msra.gmra.mrb[6].mxu0 %vm419_vm5, %v4088_v4  ;;  %4483 = vmatprep.subr.bf16.mxu0 %v4482_v5 }
 0x29a   :  { %4485 = vmatpush3.bf16.msra.mxu0 %v4482_v5  ;;  %4120 = vmatprep.mubr.msk.f32.mxu0 %vm153_vm2, %v5088_v27  ;;  %v3719_v27 = vld [vmem:[%s5719_s8 + $0x40] sm:$0xff] }
 0x29b   :  { %4495 = vmatprep.subr.bf16.mxu0 %v4494_v7 }
 0x29d   :  { %4121 = vmatmul.mubr.msk.f32.vlgmr.msra.gmra.mrb[8].mxu0 %vm153_vm2, %v5099_v28  ;;  %v3720_v28 = vld [vmem:[%s5719_s8 + $0x48] sm:$0xff] }
 0x29e   :  { %4497 = vmatpush3.bf16.msra.mxu0 %v4494_v7  ;;  %4138 = vmatprep.mubr.msk.f32.mxu0 %vm153_vm2, %v3703_v8  ;;  %v4506_v31 = vpack.c.bf16 %v3720_v28, %v3719_v27  ;;  %v1563_v7 = vld [vmem:[%s5721_s10] sm:$0xff] }
 0x29f   :  { %4499 = vmatprep.subr.bf16.mxu0 %v4498_v15  ;;  %v1567_v27 = vld [vmem:[%s5721_s10 + $0x20] sm:$0xff] }
 0x2a1   :  { %4139 = vmatmul.mubr.msk.f32.vlgmr.msra.gmra.mrb[10].mxu0 %vm153_vm2, %v3704_v9 }
 0x2a2   :  { %4501 = vmatpush3.bf16.msra.mxu0 %v4498_v15  ;;  %v3700_v15 = vld [vmem:[%s5720_s9 + $0x1] ss:$0 sm:$0xff] }
 0x2a3   :  { %4145 = vmatprep.subr.msk.mxu0 %vm252_vm3, %v3711_v16 }
 0x2a6   :  { %4146 = vmatpush3.msk.msra.mxu0 %vm252_vm3, %v3711_v16 }
 0x2a7   :  { %4507 = vmatprep.subr.bf16.mxu0 %v4506_v31 }
 0x36c   :  { %v5188_v17 = vpop.f32.mrb[6].mxu0 }
 0x36d   :  { %v5190_v18 = vpop.f32.mrb[7].mxu0  ;;  %v5284_v16 = vadd.f32 %v5188_v17, %v3676_v12 }
 0x36e   :  { %v5272_v13 = vadd.f32 %v3676_v12, %v5190_v18 }
 0x370   :  { %v4122_v19 = vpop.f32.mrb[8].mxu0 }
 0x371   :  { %v752_v21 = vpop.f32.mrb[9].mxu0 }
 0x372   :  { %4131 = vmatprep.mubr.msk.f32.mxu1 %vm419_vm5, %v752_v21 }
 0x373   :  { %4132 = vmatmul.mubr.msk.f32.vlgmr.msra.gmra.mrb[6].mxu1 %vm419_vm5, %v4122_v19  ;;  %v3724_v19 = vld [vmem:[%s5720_s9 + $0x2] ss:$0 sm:$0xff] }
 0x374   :  { %v4140_v25 = vpop.f32.mrb[10].mxu0  ;;  %4154 = vmatprep.mubr.msk.f32.mxu1 %vm153_vm2, %v3703_v8  ;;  %v1564_v8 = vld [vmem:[%s5721_s10 + $0x8] sm:$0xff] }
 0x375   :  { %v933_v26 = vpop.f32.mrb[11].mxu0  ;;  %v4534_v11 = vpack.c.bf16 %v1564_v8, %v1563_v7  ;;  %v5478_v7 = vld [vmem:[%s5723_s12] ss:$0 sm:$0xff]  ;;  %v5483_v8 = vld [vmem:[%s5723_s12 + $0x1] ss:$0 sm:$0xff] }
 0x376   :  { %4147 = vmatprep.mubr.msk.f32.mxu0 %vm245_vm4, %v933_v26  ;;  %v1566_v26 = vld [vmem:[%s5721_s10 + $0x18] sm:$0xff] }
 0x377   :  { %4148 = vmatmul.mubr.msk.f32.vlgmr.msra.gmra.mrb[12].mxu0 %vm245_vm4, %v4140_v25  ;;  %v4538_v28 = vpack.c.bf16 %v1567_v27, %v1566_v26  ;;  %v5497_v26 = vld [vmem:[%s5723_s12 + $0x2] ss:$0 sm:$0xff] }
 0x378   :  { %4509 = vmatpush3.bf16.msra.mxu0 %v4506_v31  ;;  %v1570_v31 = vld [vmem:[%s5721_s10 + $0x38] sm:$0xff] }
 0x379   :  { %4511 = vmatprep.subr.bf16.mxu0 %v4510_v33  ;;  %v4542_v32 = vpack.c.bf16 %v1570_v31, %v1569_v30 }
 0x37c   :  { %4513 = vmatpush3.bf16.msra.mxu0 %v4510_v33 }
 0x446   :  { %v5209_v34 = vpop.f32.mrb[6].mxu1 }
 0x447   :  { %v5211_v35 = vpop.f32.mrb[7].mxu1  ;;  %v5297_v21 = vadd.f32 %v5209_v34, %v3700_v15 }
 0x448   :  { %v5287_v18 = vadd.f32 %v3700_v15, %v5211_v35  ;;  %v1568_v35 = vld [vmem:[%s5721_s10 + $0x28] sm:$0xff] }
 0x44a   :  { %v4149_v37 = vpop.f32.mrb[12].mxu0 }
 0x44b   :  { %v1035_v38 = vadd.f32 %v4149_v37, %v3713_v36  ;;  %v1029_v39 = vpop.f32.mrb[13].mxu0  ;;  %v1573_v37 = vld [vmem:[%s5721_s10 + $0x50] sm:$0xff] }
 0x44c   :  { %v1030_v40 = vadd.f32 %v3713_v36, %v1029_v39  ;;  %v1572_v36 = vld [vmem:[%s5721_s10 + $0x48] sm:$0xff]  ;;  %v1571_v39 = vld [vmem:[%s5721_s10 + $0x40] sm:$0xff] }
 0x44d   :  { %v1039_v41 = vmax.f32 %v1035_v38, 0.0  ;;  %v4546_v38 = vpack.c.bf16 %v1573_v37, %v1572_v36 }
 0x44e   :  { %v1038_v44 = vmax.f32 %v1030_v40, 0.0  ;;  %v1574_v40 = vld [vmem:[%s5721_s10 + $0x58] sm:$0xff] }
 0x450   :  { %v4502_v45 = vpack.c.bf16 %v1039_v41, %v1038_v44  ;;  %v1575_v41 = vld [vmem:[%s5722_s11] sm:$0xff] }
 0x451   :  { %v5359_v44 = vpack.c.bf16 %v1576_v42, %v1575_v41 }
 0x452   :  { %4503 = vmatprep.subr.bf16.mxu1 %v4502_v45 }
 0x453   :  { %4505 = vmatpush3.bf16.msra.mxu1 %v4502_v45  ;;  %v1580_v45 = vld [vmem:[%s5722_s11 + $0x28] sm:$0xff] }
 0x454   :  { %4515 = vmatprep.subr.bf16.mxu1 %v4514_v46 }
 0x456   :  { %4155 = vmatmul.mubr.msk.f32.vlgmr.msra.gmra.mrb[8].mxu1 %vm153_vm2, %v3704_v9 }
 0x457   :  { %4517 = vmatpush3.bf16.msra.mxu1 %v4514_v46  ;;  %4172 = vmatprep.mubr.msk.f32.mxu1 %vm153_vm2, %v3727_v47  ;;  %v5364_v46 = vpack.c.bf16 %v1580_v45, %v1579_v43 }
 0x458   :  { %4519 = vmatprep.subr.bf16.mxu1 %v4518_v51 }
 0x45a   :  { %4173 = vmatmul.mubr.msk.f32.vlgmr.msra.gmra.mrb[10].mxu1 %vm153_vm2, %v3728_v48 }
 0x45b   :  { %4521 = vmatpush3.bf16.msra.mxu1 %v4518_v51 }
 0x45c   :  { %4179 = vmatprep.subr.msk.mxu1 %vm252_vm3, %v3735_v52 }
 0x45f   :  { %4180 = vmatpush3.msk.msra.mxu1 %vm252_vm3, %v3735_v52  ;;  %v1577_v52 = vld [vmem:[%s5722_s11 + $0x10] sm:$0xff] }
 0x460   :  { %4527 = vmatprep.subr.bf16.mxu1 %v4526_v60 }
 0x529   :  { %v4156_v53 = vpop.f32.mrb[8].mxu1 }
 0x52a   :  { %v1106_v54 = vpop.f32.mrb[9].mxu1 }
 0x52b   :  { %4165 = vmatprep.mubr.msk.f32.mxu0 %vm419_vm5, %v1106_v54  ;;  %v1581_v54 = vld [vmem:[%s5722_s11 + $0x30] sm:$0xff] }
 0x52c   :  { %4166 = vmatmul.mubr.msk.f32.vlgmr.msra.gmra.mrb[14].mxu0 %vm419_vm5, %v4156_v53  ;;  %v1578_v53 = vld [vmem:[%s5722_s11 + $0x18] sm:$0xff] }
 0x52d   :  { %v4174_v55 = vpop.f32.mrb[10].mxu1  ;;  %4188 = vmatprep.mubr.msk.f32.mxu0 %vm153_vm2, %v3727_v47  ;;  %v3748_v47 = vld [vmem:[%s5720_s9 + $0x3] ss:$0 sm:$0xff] }
 0x52e   :  { %v1287_v56 = vpop.f32.mrb[11].mxu1 }
 0x52f   :  { %4181 = vmatprep.mubr.msk.f32.mxu1 %vm245_vm4, %v1287_v56  ;;  %v5391_v56 = vpack.c.bf16 %v1578_v53, %v1577_v52 }
 0x530   :  { %4182 = vmatmul.mubr.msk.f32.vlgmr.msra.gmra.mrb[12].mxu1 %vm245_vm4, %v4174_v55  ;;  %v1582_v55 = vld [vmem:[%s5722_s11 + $0x38] sm:$0xff] }
 0x531   :  { %4529 = vmatpush3.bf16.msra.mxu1 %v4526_v60  ;;  %v5393_v57 = vpack.c.bf16 %v1582_v55, %v1581_v54  ;;  %v1587_v60 = vld [vmem:[%s5722_s11 + $0x60] sm:$0xff] }
 0x532   :  { %4531 = vmatprep.subr.bf16.mxu1 %v4530_v62 }
 0x535   :  { %4533 = vmatpush3.bf16.msra.mxu1 %v4530_v62  ;;  %v5419_v62 = vpack.c.bf16 %v1584_v59, %v1583_v58 }
 0x536   :  { %4539 = vmatprep.subr.bf16.mxu1 %v4538_v28 }
 0x5ff   :  { %v4167_v63 = vpop.f32.mrb[14].mxu0 }
 0x600   :  { %v1200_v0 = vpop.f32.mrb[15].mxu0  ;;  %v5305_v17 = vadd.f32 %v4167_v63, %v3724_v19  ;;  %v5421_v63 = vpack.c.bf16 %v1588_v61, %v1587_v60 }
 0x601   :  { %v5299_v25 = vadd.f32 %v3724_v19, %v1200_v0  ;;  %v1585_v0 = vld [vmem:[%s5722_s11 + $0x50] sm:$0xff] }
 0x603   :  { %v4183_v2 = vpop.f32.mrb[12].mxu1 }
 0x604   :  { %v1389_v3 = vadd.f32 %v4183_v2, %v3737_v1  ;;  %v1383_v4 = vpop.f32.mrb[13].mxu1  ;;  %v1589_v2 = vld [vmem:[%s5722_s11 + $0x70] sm:$0xff] }
 0x605   :  { %v1384_v5 = vadd.f32 %v3737_v1, %v1383_v4  ;;  %v1586_v1 = vld [vmem:[%s5722_s11 + $0x58] sm:$0xff]  ;;  %v4943_v4 = vmov 0.0  }
 0x606   :  { %v1393_v6 = vmax.f32 %v1389_v3, 0.0  ;;  %v1590_v3 = vld [vmem:[%s5722_s11 + $0x78] sm:$0xff] }
 0x607   :  { %v1392_v9 = vmax.f32 %v1384_v5, 0.0  ;;  %v5455_v5 = vpack.c.bf16 %v1586_v1, %v1585_v0 }
 0x609   :  { %v4522_v10 = vpack.c.bf16 %v1393_v6, %v1392_v9  ;;  %v5457_v6 = vpack.c.bf16 %v1590_v3, %v1589_v2 }
 0x60b   :  { %4523 = vmatprep.subr.bf16.mxu0 %v4522_v10 }
 0x60c   :  { %4525 = vmatpush3.bf16.msra.mxu0 %v4522_v10 }
 0x60d   :  { %4535 = vmatprep.subr.bf16.mxu0 %v4534_v11 }
 0x60f   :  { %4189 = vmatmul.mubr.msk.f32.vlgmr.msra.gmra.mrb[16].mxu0 %vm153_vm2, %v3728_v48 }
 0x610   :  { %4537 = vmatpush3.bf16.msra.mxu0 %v4534_v11  ;;  %4208 = vmatprep.mubr.msk.f32.mxu0 %vm1601_vm6, %v5272_v13 }
 0x611   :  { %4206 = vmatprep.subr.mxu0 %v1565_v14 }
 0x614   :  { %4207 = vmatpush3.msra.mxu0 %v1565_v14 }
 0x615   :  { %4209 = vmatmul.mubr.msk.f32.vlgmr.msra.gmra.mrb[18].mxu0 %vm1601_vm6, %v5284_v16  ;;  %4543 = vmatprep.subr.bf16.mxu0 %v4542_v32 }
 0x616   :  { %4211 = vmatprep.mubr.msk.f32.mxu0 %vm1601_vm6, %v5287_v18  ;;  %4545 = vmatpush3.bf16.msra.mxu0 %v4542_v32 }
 0x617   :  { %4242 = vmatprep.subr.mxu0 %v1571_v39 }
 0x619   :  { %4212 = vmatmul.mubr.msk.f32.gmra.mrb[20].mxu0 %vm1601_vm6, %v5297_v21 }
 0x61a   :  { %4214 = vmatprep.mubr.msk.f32.mxu0 %vm1601_vm6, %v5299_v25  ;;  %4243 = vmatpush3.msra.mxu0 %v1571_v39 }
 0x61b   :  { %4551 = vmatprep.subr.bf16.mxu0 %v5359_v44 }
 0x61d   :  { %4215 = vmatmul.mubr.msk.f32.gmra.mrb[22].mxu0 %vm1601_vm6, %v5305_v17 }
 0x6e2   :  { %v4190_v33 = vpop.f32.mrb[16].mxu0 }
 0x6e3   :  { %v1460_v34 = vpop.f32.mrb[17].mxu0 }
 0x6e4   :  { %4199 = vmatprep.mubr.msk.f32.mxu1 %vm419_vm5, %v1460_v34 }
 0x6e5   :  { %4200 = vmatmul.mubr.msk.f32.vlgmr.msra.gmra.mrb[14].mxu1 %vm419_vm5, %v4190_v33 }
 0x6e6   :  { %4541 = vmatpush3.bf16.msra.mxu1 %v4538_v28  ;;  %4226 = vmatprep.mubr.msk.f32.mxu1 %vm1601_vm6, %v5272_v13 }
 0x6e7   :  { %4224 = vmatprep.subr.mxu1 %v1568_v35 }
 0x6ea   :  { %4225 = vmatpush3.msra.mxu1 %v1568_v35 }
 0x6eb   :  { %4227 = vmatmul.mubr.msk.f32.vlgmr.msra.gmra.mrb[16].mxu1 %vm1601_vm6, %v5284_v16  ;;  %4547 = vmatprep.subr.bf16.mxu1 %v4546_v38 }
 0x6ec   :  { %4229 = vmatprep.mubr.msk.f32.mxu1 %vm1601_vm6, %v5287_v18  ;;  %4549 = vmatpush3.bf16.msra.mxu1 %v4546_v38 }
 0x6ed   :  { %4260 = vmatprep.subr.mxu1 %v1574_v40 }
 0x6ef   :  { %4230 = vmatmul.mubr.msk.f32.gmra.mrb[18].mxu1 %vm1601_vm6, %v5297_v21 }
 0x6f0   :  { %4232 = vmatprep.mubr.msk.f32.mxu1 %vm1601_vm6, %v5299_v25  ;;  %4261 = vmatpush3.msra.mxu1 %v1574_v40 }
 0x6f1   :  { %4559 = vmatprep.subr.bf16.mxu1 %v5364_v46 }
 0x6f3   :  { %4233 = vmatmul.mubr.msk.f32.gmra.mrb[20].mxu1 %vm1601_vm6, %v5305_v17 }
 0x7b8   :  { %v4201_v48 = vpop.f32.mrb[14].mxu1 }
 0x7b9   :  { %v1554_v49 = vpop.f32.mrb[15].mxu1  ;;  %v1560_v51 = vadd.f32 %v4201_v48, %v3748_v47 }
 0x7ba   :  { %v1555_v50 = vadd.f32 %v3748_v47, %v1554_v49 }
 0x7bc   :  { %4217 = vmatprep.mubr.msk.f32.mxu0 %vm1601_vm6, %v1555_v50  ;;  %4235 = vmatprep.mubr.msk.f32.mxu1 %vm1601_vm6, %v1555_v50 }
 0x7bd   :  { %4218 = vmatmul.mubr.msk.f32.gmra.mrb[24].mxu0 %vm1601_vm6, %v1560_v51  ;;  %4236 = vmatmul.mubr.msk.f32.gmra.mrb[22].mxu1 %vm1601_vm6, %v1560_v51 }
 0x7be   :  { %4244 = vmatprep.mubr.msk.f32.mxu0 %vm1601_vm6, %v5272_v13  ;;  %4262 = vmatprep.mubr.msk.f32.mxu1 %vm1601_vm6, %v5272_v13 }
 0x7c1   :  { %4245 = vmatmul.mubr.msk.f32.vlgmr.msra.gmra.mrb[26].mxu0 %vm1601_vm6, %v5284_v16  ;;  %4263 = vmatmul.mubr.msk.f32.vlgmr.msra.gmra.mrb[24].mxu1 %vm1601_vm6, %v5284_v16 }
 0x7c2   :  { %4247 = vmatprep.mubr.msk.f32.mxu0 %vm1601_vm6, %v5287_v18  ;;  %4265 = vmatprep.mubr.msk.f32.mxu1 %vm1601_vm6, %v5287_v18 }
 0x7c3   :  { %4553 = vmatpush3.bf16.msra.mxu0 %v5359_v44  ;;  %4561 = vmatpush3.bf16.msra.mxu1 %v5364_v46 }
 0x7c4   :  { %4555 = vmatprep.subr.bf16.mxu0 %v5391_v56  ;;  %4563 = vmatprep.subr.bf16.mxu1 %v5393_v57 }
 0x7c5   :  { %4248 = vmatmul.mubr.msk.f32.gmra.mrb[28].mxu0 %vm1601_vm6, %v5297_v21  ;;  %4266 = vmatmul.mubr.msk.f32.gmra.mrb[26].mxu1 %vm1601_vm6, %v5297_v21 }
 0x7c6   :  { %4250 = vmatprep.mubr.msk.f32.mxu0 %vm1601_vm6, %v5299_v25  ;;  %4268 = vmatprep.mubr.msk.f32.mxu1 %vm1601_vm6, %v5299_v25 }
 0x7c7   :  { %4557 = vmatpush3.bf16.msra.mxu0 %v5391_v56  ;;  %4565 = vmatpush3.bf16.msra.mxu1 %v5393_v57 }
 0x7c8   :  { %4567 = vmatprep.subr.bf16.mxu0 %v5419_v62  ;;  %4575 = vmatprep.subr.bf16.mxu1 %v5421_v63 }
 0x7c9   :  { %4251 = vmatmul.mubr.msk.f32.gmra.mrb[30].mxu0 %vm1601_vm6, %v5305_v17  ;;  %4269 = vmatmul.mubr.msk.f32.gmra.mrb[28].mxu1 %vm1601_vm6, %v5305_v17  ;;  %v5492_v17 = vld [vmem:[%s5723_s12 + $0x3] ss:$0 sm:$0xff] }
 0x7ca   :  { %4253 = vmatprep.mubr.msk.f32.mxu0 %vm1601_vm6, %v1555_v50  ;;  %4271 = vmatprep.mubr.msk.f32.mxu1 %vm1601_vm6, %v1555_v50 }
 0x7cd   :  { %4254 = vmatmul.mubr.msk.f32.gmra.mrb[32].mxu0 %vm1601_vm6, %v1560_v51  ;;  %4272 = vmatmul.mubr.msk.f32.gmra.mrb[30].mxu1 %vm1601_vm6, %v1560_v51 }
 0x7ce   :  { %4282 = vmatprep.mubr.f32.mxu0 %v4943_v4  ;;  %4293 = vmatprep.mubr.f32.mxu1 %v4943_v4 }
 0x7d1   :  { %4283 = vmatmul.mubr.f32.vlgmr.msra.gmra.mrb[18].mxu0 %v4943_v4  ;;  %4294 = vmatmul.mubr.f32.vlgmr.msra.gmra.mrb[16].mxu1 %v4943_v4 }
 0x7d2   :  { %4569 = vmatpush3.bf16.msra.mxu0 %v5419_v62  ;;  %4577 = vmatpush3.bf16.msra.mxu1 %v5421_v63 }
 0x7d3   :  { %4571 = vmatprep.subr.bf16.mxu0 %v5455_v5  ;;  %4579 = vmatprep.subr.bf16.mxu1 %v5457_v6 }
 0x7d4   :  { %4304 = vmatprep.mubr.f32.mxu0 %v4943_v4  ;;  %4315 = vmatprep.mubr.f32.mxu1 %v4943_v4 }
 0x7d6   :  { %4573 = vmatpush3.bf16.msra.mxu0 %v5455_v5  ;;  %4581 = vmatpush3.bf16.msra.mxu1 %v5457_v6 }
 0x7d7   :  { %4583 = vmatprep.subr.bf16.mxu0 %v5359_v44  ;;  %4591 = vmatprep.subr.bf16.mxu1 %v5364_v46 }
 0x7d9   :  { %4305 = vmatmul.mubr.f32.vlgmr.msra.gmra.mrb[26].mxu0 %v4943_v4  ;;  %4316 = vmatmul.mubr.f32.vlgmr.msra.gmra.mrb[24].mxu1 %v4943_v4 }
 0x7da   :  { %4585 = vmatpush3.bf16.msra.mxu0 %v5359_v44  ;;  %4593 = vmatpush3.bf16.msra.mxu1 %v5364_v46 }
 0x7db   :  { %4587 = vmatprep.subr.bf16.mxu0 %v5391_v56  ;;  %4595 = vmatprep.subr.bf16.mxu1 %v5393_v57 }
 0x7de   :  { %4589 = vmatpush3.bf16.msra.mxu0 %v5391_v56  ;;  %4597 = vmatpush3.bf16.msra.mxu1 %v5393_v57 }
 0x7df   :  { %4599 = vmatprep.subr.bf16.mxu0 %v5419_v62  ;;  %4607 = vmatprep.subr.bf16.mxu1 %v5421_v63 }
 0x8a4   :  { %v4284_v9 = vpop.f32.mrb[18].mxu0  ;;  %v4295_v10 = vpop.f32.mrb[16].mxu1 }
 0x8a5   :  { %v4678_v11 = vadd.f32 %v4284_v9, %v5478_v7  ;;  %v4686_v12 = vadd.f32 %v4295_v10, %v5483_v8  ;;  %v2133_v13 = vpop.f32.mrb[19].mxu0  ;;  %v2222_v14 = vpop.f32.mrb[17].mxu1 }
 0x8a6   :  { %v4679_v15 = vadd.f32 %v5478_v7, %v2133_v13  ;;  %v4687_v16 = vadd.f32 %v5483_v8, %v2222_v14 }
 0x8a7   :  { %v3788_v18 = vmul.f32 -1.442695, %v4678_v11  ;;  %v3790_v19 = vmul.f32 -1.442695, %v4686_v12 }
 0x8a8   :  { %v3787_v21 = vmul.f32 -1.442695, %v4679_v15  ;;  %v3789_v25 = vmul.f32 -1.442695, %v4687_v16 }
 0x8a9   :  { %4750 = vpow2.f32 %v3788_v18 }
 0x8aa   :  { %4752 = vpow2.f32 %v3790_v19 }
 0x8ab   :  { %4754 = vpow2.f32 %v3787_v21 }
 0x8ac   :  { %4756 = vpow2.f32 %v3789_v25  ;;  %v4306_v27 = vpop.f32.mrb[26].mxu0  ;;  %v4317_v28 = vpop.f32.mrb[24].mxu1 }
 0x8ad   :  { %v4702_v30 = vadd.f32 %v4317_v28, %v5492_v17  ;;  %v2311_v31 = vpop.f32.mrb[27].mxu0  ;;  %v2390_v32 = vpop.f32.mrb[25].mxu1  ;;  %v4694_v33 = vadd.f32 %v4306_v27, %v5497_v26 }
 0x8ae   :  { %v4703_v34 = vadd.f32 %v5492_v17, %v2390_v32  ;;  %v4695_v35 = vadd.f32 %v5497_v26, %v2311_v31 }
 0x8af   :  { %v3792_v36 = vmul.f32 -1.442695, %v4702_v30  ;;  %4758 = vtanh.f32 %v4694_v33 }
 0x8b0   :  { %v3791_v37 = vmul.f32 -1.442695, %v4703_v34  ;;  %4760 = vtanh.f32 %v4695_v35 }
 0x8b1   :  { %4762 = vpow2.f32 %v3792_v36 }
 0x8b2   :  { %4764 = vpow2.f32 %v3791_v37 }
 0x8b3   :  { %v4751_v38 = vpop.eup %4750 }
 0x8b4   :  { %v4753_v39 = vpop.eup %4752  ;;  %v2151_v40 = vadd.f32 1.0, %v4751_v38 }
 0x8b5   :  { %v4755_v41 = vpop.eup %4754  ;;  %v2240_v42 = vadd.f32 1.0, %v4753_v39 }
 0x8b6   :  { %v4757_v43 = vpop.eup %4756  ;;  %4766 = vrcp.f32 %v2151_v40  ;;  %v2150_v45 = vadd.f32 1.0, %v4755_v41 }
 0x8b7   :  { %4768 = vrcp.f32 %v2240_v42  ;;  %v2239_v47 = vadd.f32 1.0, %v4757_v43 }
 0x8b8   :  { %4770 = vrcp.f32 %v2150_v45 }
 0x8b9   :  { %4772 = vrcp.f32 %v2239_v47  ;;  %v4759_v48 = vpop.eup %4758 }
 0x8ba   :  { %v4761_v49 = vpop.eup %4760 }
 0x8bb   :  { %v4763_v50 = vpop.eup %4762 }
 0x8bc   :  { %v4765_v51 = vpop.eup %4764  ;;  %v2408_v55 = vadd.f32 1.0, %v4763_v50 }
 0x8bd   :  { %v2407_v0 = vadd.f32 1.0, %v4765_v51 }
 0x8be   :  { %4774 = vrcp.f32 %v2408_v55 }
 0x8c0   :  { %v4767_v52 = vpop.eup %4766 }
 0x8c1   :  { %v4769_v53 = vpop.eup %4768  ;;  %v2416_v54 = vmul.f32 %v4767_v52, %v4759_v48 }
 0x8c2   :  { %v4771_v58 = vpop.eup %4770  ;;  %v2414_v59 = vmul.f32 0.0, %v4769_v53 }
 0x8c3   :  { %v4773_v60 = vpop.eup %4772  ;;  %v2415_v61 = vmul.f32 %v4771_v58, %v4761_v49 }
 0x8c4   :  { %v2413_v1 = vmul.f32 0.0, %v4773_v60  ;;  %v5503_v2 = vadd.f32 %v2416_v54, %v2414_v59 }
 0x8c6   :  { %4776 = vtanh.f32 %v5503_v2  ;;  %v5506_v3 = vadd.f32 %v2415_v61, %v2413_v1 }
 0x8c7   :  { %4778 = vrcp.f32 %v2407_v0 }
 0x8c8   :  { %4780 = vtanh.f32 %v5506_v3  ;;  %v4775_v4 = vpop.eup %4774 }
 0x8d0   :  { %v4777_v9 = vpop.eup %4776 }
 0x8d1   :  { %v4779_v10 = vpop.eup %4778  ;;  %v5509_v11 = vmul.f32 %v4777_v9, %v4775_v4 }
 0x8d2   :  { %v4781_v12 = vpop.eup %4780 }
 0x8d3   :  { %v5511_v13 = vmul.f32 %v4781_v12, %v4779_v10  ;;  %4782 = vtanh.f32 %v5509_v11 }
 0x8d5   :  { %4326 = vmatprep.mubr.msk.f32.mxu0 %vm419_vm5, %v5511_v13  ;;  %4337 = vmatprep.mubr.msk.f32.mxu1 %vm419_vm5, %v5511_v13  ;;  %4784 = vtanh.f32 %v5511_v13 }
 0x8d6   :  { %4327 = vmatmul.mubr.msk.f32.vlgmr.msra.gmra.mrb[20].mxu0 %vm419_vm5, %v5509_v11  ;;  %4338 = vmatmul.mubr.msk.f32.vlgmr.msra.gmra.mrb[18].mxu1 %vm419_vm5, %v5509_v11 }
 0x8d7   :  { %4601 = vmatpush3.bf16.msra.mxu0 %v5419_v62  ;;  %4609 = vmatpush3.bf16.msra.mxu1 %v5421_v63 }
 0x8d8   :  { %4348 = vmatprep.mubr.msk.f32.mxu0 %vm419_vm5, %v5511_v13  ;;  %4359 = vmatprep.mubr.msk.f32.mxu1 %vm419_vm5, %v5511_v13 }
 0x8d9   :  { %4603 = vmatprep.subr.bf16.mxu0 %v5455_v5  ;;  %4611 = vmatprep.subr.bf16.mxu1 %v5457_v6 }
 0x8db   :  { %4605 = vmatpush3.bf16.msra.mxu0 %v5455_v5  ;;  %4613 = vmatpush3.bf16.msra.mxu1 %v5457_v6 }
 0x8dc   :  { %4615 = vmatprep.subr.bf16.mxu0 %v5359_v44  ;;  %4623 = vmatprep.subr.bf16.mxu1 %v5364_v46 }
 0x8dd   :  { %v4783_v14 = vpop.eup %4782 }
 0x8de   :  { %4349 = vmatmul.mubr.msk.f32.vlgmr.msra.gmra.mrb[28].mxu0 %vm419_vm5, %v5509_v11  ;;  %4360 = vmatmul.mubr.msk.f32.vlgmr.msra.gmra.mrb[26].mxu1 %vm419_vm5, %v5509_v11  ;;  %v3533_v15 = vmul.f32 %v4783_v14, %v5106_v29 }
 0x8df   :  { %v4785_v16 = vpop.eup %4784  ;;  %4617 = vmatpush3.bf16.msra.mxu0 %v5359_v44  ;;  %4625 = vmatpush3.bf16.msra.mxu1 %v5364_v46 }
 0x8e0   :  { %v3537_v18 = vsel %vm419_vm5, %v3533_v15, 0.0  ;;  %v3532_v19 = vmul.f32 %v4785_v16, %v5106_v29  ;;  %4619 = vmatprep.subr.bf16.mxu0 %v5391_v56  ;;  %4627 = vmatprep.subr.bf16.mxu1 %v5393_v57 }
 0x8e1   :  { %3538 = vadd.xlane.f32.xlu1 %v3537_v18 }
 0x8e2   :  { %v3534_v21 = vsel %vm419_vm5, %v3532_v19, 0.0 }
 0x8e3   :  { %4621 = vmatpush3.bf16.msra.mxu0 %v5391_v56  ;;  %4629 = vmatpush3.bf16.msra.mxu1 %v5393_v57 }
 0x8e4   :  { %4631 = vmatprep.subr.bf16.mxu0 %v5419_v62  ;;  %4639 = vmatprep.subr.bf16.mxu1 %v5421_v63 }
 0x8e5   :  { %3535 = vadd.xlane.f32.xlu1 %v3534_v21 }
 0x9a9   :  { %v4328_v25 = vpop.f32.mrb[20].mxu0  ;;  %v4339_v27 = vpop.f32.mrb[18].mxu1 }
 0x9aa   :  { %v4680_v28 = vadd.f32 %v4328_v25, %v5478_v7  ;;  %v4688_v30 = vadd.f32 %v4339_v27, %v5483_v8  ;;  %v2495_v31 = vpop.f32.mrb[21].mxu0  ;;  %v2584_v32 = vpop.f32.mrb[19].mxu1 }
 0x9ab   :  { %v4681_v33 = vadd.f32 %v5478_v7, %v2495_v31  ;;  %v4689_v34 = vadd.f32 %v5483_v8, %v2584_v32 }
 0x9ac   :  { %v3796_v35 = vmul.f32 -1.442695, %v4680_v28  ;;  %v3800_v36 = vmul.f32 -1.442695, %v4688_v30 }
 0x9ad   :  { %v3795_v37 = vmul.f32 -1.442695, %v4681_v33  ;;  %v3799_v38 = vmul.f32 -1.442695, %v4689_v34 }
 0x9ae   :  { %4786 = vpow2.f32 %v3796_v35 }
 0x9af   :  { %4788 = vpow2.f32 %v3800_v36 }
 0x9b0   :  { %4790 = vpow2.f32 %v3795_v37 }
 0x9b1   :  { %4792 = vpow2.f32 %v3799_v38  ;;  %v4350_v39 = vpop.f32.mrb[28].mxu0  ;;  %v4361_v40 = vpop.f32.mrb[26].mxu1 }
 0x9b2   :  { %v4704_v41 = vadd.f32 %v4361_v40, %v5492_v17  ;;  %v2673_v42 = vpop.f32.mrb[29].mxu0  ;;  %v2752_v43 = vpop.f32.mrb[27].mxu1  ;;  %v4696_v45 = vadd.f32 %v4350_v39, %v5497_v26 }
 0x9b3   :  { %v4705_v47 = vadd.f32 %v5492_v17, %v2752_v43  ;;  %v4697_v48 = vadd.f32 %v5497_v26, %v2673_v42 }
 0x9b4   :  { %v3806_v49 = vmul.f32 -1.442695, %v4704_v41  ;;  %4794 = vtanh.f32 %v4696_v45 }
 0x9b5   :  { %v3805_v50 = vmul.f32 -1.442695, %v4705_v47  ;;  %4796 = vtanh.f32 %v4697_v48 }
 0x9b6   :  { %4798 = vpow2.f32 %v3806_v49 }
 0x9b7   :  { %4800 = vpow2.f32 %v3805_v50 }
 0x9b8   :  { %v4787_v51 = vpop.eup %4786 }
 0x9b9   :  { %v4789_v52 = vpop.eup %4788  ;;  %v2513_v53 = vadd.f32 1.0, %v4787_v51 }
 0x9ba   :  { %v4791_v54 = vpop.eup %4790  ;;  %v2602_v55 = vadd.f32 1.0, %v4789_v52 }
 0x9bb   :  { %v4793_v58 = vpop.eup %4792  ;;  %4802 = vrcp.f32 %v2513_v53  ;;  %v2512_v59 = vadd.f32 1.0, %v4791_v54 }
 0x9bc   :  { %4804 = vrcp.f32 %v2602_v55  ;;  %v2601_v60 = vadd.f32 1.0, %v4793_v58 }
 0x9bd   :  { %4806 = vrcp.f32 %v2512_v59 }
 0x9be   :  { %4808 = vrcp.f32 %v2601_v60  ;;  %v4795_v61 = vpop.eup %4794 }
 0x9bf   :  { %v4797_v0 = vpop.eup %4796 }
 0x9c0   :  { %v4799_v1 = vpop.eup %4798 }
 0x9c1   :  { %v4801_v4 = vpop.eup %4800  ;;  %v2770_v14 = vadd.f32 1.0, %v4799_v1 }
 0x9c2   :  { %v2769_v21 = vadd.f32 1.0, %v4801_v4 }
 0x9c3   :  { %4810 = vrcp.f32 %v2770_v14 }
 0x9c5   :  { %v4803_v9 = vpop.eup %4802 }
 0x9c6   :  { %v4805_v10 = vpop.eup %4804  ;;  %v2778_v12 = vmul.f32 %v4803_v9, %v4795_v61 }
 0x9c7   :  { %v4807_v15 = vpop.eup %4806  ;;  %v2776_v16 = vmul.f32 %v4805_v10, %v5503_v2 }
 0x9c8   :  { %v4809_v18 = vpop.eup %4808  ;;  %v2777_v19 = vmul.f32 %v4807_v15, %v4797_v0 }
 0x9c9   :  { %v2775_v25 = vmul.f32 %v4809_v18, %v5506_v3  ;;  %v5561_v27 = vadd.f32 %v2778_v12, %v2776_v16 }
 0x9cb   :  { %4812 = vtanh.f32 %v5561_v27  ;;  %v5564_v28 = vadd.f32 %v2777_v19, %v2775_v25 }
 0x9cc   :  { %4814 = vrcp.f32 %v2769_v21 }
 0x9cd   :  { %4816 = vtanh.f32 %v5564_v28  ;;  %v4811_v30 = vpop.eup %4810 }
 0x9d5   :  { %v4813_v31 = vpop.eup %4812 }
 0x9d6   :  { %v4815_v32 = vpop.eup %4814  ;;  %v5567_v33 = vmul.f32 %v4813_v31, %v4811_v30 }
 0x9d7   :  { %v4817_v2 = vpop.eup %4816 }
 0x9d8   :  { %v5569_v34 = vmul.f32 %v4817_v2, %v4815_v32  ;;  %4818 = vtanh.f32 %v5567_v33 }
 0x9da   :  { %4370 = vmatprep.mubr.msk.f32.mxu0 %vm419_vm5, %v5569_v34  ;;  %4381 = vmatprep.mubr.msk.f32.mxu1 %vm419_vm5, %v5569_v34  ;;  %4820 = vtanh.f32 %v5569_v34 }
 0x9db   :  { %4371 = vmatmul.mubr.msk.f32.vlgmr.msra.gmra.mrb[22].mxu0 %vm419_vm5, %v5567_v33  ;;  %4382 = vmatmul.mubr.msk.f32.vlgmr.msra.gmra.mrb[20].mxu1 %vm419_vm5, %v5567_v33 }
 0x9dc   :  { %4633 = vmatpush3.bf16.msra.mxu0 %v5419_v62  ;;  %4641 = vmatpush3.bf16.msra.mxu1 %v5421_v63 }
 0x9dd   :  { %4392 = vmatprep.mubr.msk.f32.mxu0 %vm419_vm5, %v5569_v34  ;;  %4403 = vmatprep.mubr.msk.f32.mxu1 %vm419_vm5, %v5569_v34 }
 0x9de   :  { %4635 = vmatprep.subr.bf16.mxu0 %v5455_v5  ;;  %4643 = vmatprep.subr.bf16.mxu1 %v5457_v6 }
 0x9e0   :  { %4637 = vmatpush3.bf16.msra.mxu0 %v5455_v5  ;;  %4645 = vmatpush3.bf16.msra.mxu1 %v5457_v6 }
 0x9e1   :  { %4647 = vmatprep.subr.bf16.mxu0 %v5359_v44  ;;  %4655 = vmatprep.subr.bf16.mxu1 %v5364_v46 }
 0x9e2   :  { %v4819_v3 = vpop.eup %4818 }
 0x9e3   :  { %4393 = vmatmul.mubr.msk.f32.vlgmr.msra.gmra.mrb[30].mxu0 %vm419_vm5, %v5567_v33  ;;  %4404 = vmatmul.mubr.msk.f32.vlgmr.msra.gmra.mrb[28].mxu1 %vm419_vm5, %v5567_v33  ;;  %v3545_v35 = vmul.f32 %v4819_v3, %v5106_v29 }
 0x9e4   :  { %v4821_v36 = vpop.eup %4820  ;;  %4649 = vmatpush3.bf16.msra.mxu0 %v5359_v44  ;;  %4657 = vmatpush3.bf16.msra.mxu1 %v5364_v46 }
 0x9e5   :  { %v3549_v37 = vsel %vm419_vm5, %v3545_v35, 0.0  ;;  %v3544_v38 = vmul.f32 %v4821_v36, %v5106_v29  ;;  %4651 = vmatprep.subr.bf16.mxu0 %v5391_v56  ;;  %4659 = vmatprep.subr.bf16.mxu1 %v5393_v57 }
 0x9e6   :  { %3550 = vadd.xlane.f32.xlu1 %v3549_v37 }
 0x9e7   :  { %v3546_v39 = vsel %vm419_vm5, %v3544_v38, 0.0 }
 0x9e8   :  { %3547 = vadd.xlane.f32.xlu0 %v3546_v39  ;;  %4653 = vmatpush3.bf16.msra.mxu0 %v5391_v56 }
 0x9e9   :  { %4661 = vmatpush3.bf16.msra.mxu1 %v5393_v57  ;;  %4663 = vmatprep.subr.bf16.mxu0 %v5419_v62 }
 0x9ea   :  { %4671 = vmatprep.subr.bf16.mxu1 %v5421_v63 }
 0xaae   :  { %v4372_v44 = vpop.f32.mrb[22].mxu0  ;;  %v4383_v46 = vpop.f32.mrb[20].mxu1 }
 0xaaf   :  { %v4682_v29 = vadd.f32 %v4372_v44, %v5478_v7  ;;  %v4690_v40 = vadd.f32 %v4383_v46, %v5483_v8  ;;  %v2857_v41 = vpop.f32.mrb[23].mxu0  ;;  %v2946_v42 = vpop.f32.mrb[21].mxu1 }
 0xab0   :  { %v4683_v43 = vadd.f32 %v5478_v7, %v2857_v41  ;;  %v4691_v45 = vadd.f32 %v5483_v8, %v2946_v42 }
 0xab1   :  { %v3810_v47 = vmul.f32 -1.442695, %v4682_v29  ;;  %v3814_v56 = vmul.f32 -1.442695, %v4690_v40 }
 0xab2   :  { %v3809_v48 = vmul.f32 -1.442695, %v4683_v43  ;;  %v3813_v57 = vmul.f32 -1.442695, %v4691_v45 }
 0xab3   :  { %4822 = vpow2.f32 %v3810_v47 }
 0xab4   :  { %4824 = vpow2.f32 %v3814_v56 }
 0xab5   :  { %4826 = vpow2.f32 %v3809_v48 }
 0xab6   :  { %4828 = vpow2.f32 %v3813_v57  ;;  %v4394_v49 = vpop.f32.mrb[30].mxu0  ;;  %v4405_v50 = vpop.f32.mrb[28].mxu1 }
 0xab7   :  { %v4706_v51 = vadd.f32 %v4405_v50, %v5492_v17  ;;  %v3035_v52 = vpop.f32.mrb[31].mxu0  ;;  %v3114_v53 = vpop.f32.mrb[29].mxu1  ;;  %v4698_v54 = vadd.f32 %v4394_v49, %v5497_v26 }
 0xab8   :  { %v4707_v55 = vadd.f32 %v5492_v17, %v3114_v53  ;;  %v4699_v58 = vadd.f32 %v5497_v26, %v3035_v52 }
 0xab9   :  { %v3820_v59 = vmul.f32 -1.442695, %v4706_v51  ;;  %4830 = vtanh.f32 %v4698_v54 }
 0xaba   :  { %v3819_v60 = vmul.f32 -1.442695, %v4707_v55  ;;  %4832 = vtanh.f32 %v4699_v58 }
 0xabb   :  { %4834 = vpow2.f32 %v3820_v59 }
 0xabc   :  { %4836 = vpow2.f32 %v3819_v60 }
 0xabd   :  { %v4823_v61 = vpop.eup %4822 }
 0xabe   :  { %v4825_v0 = vpop.eup %4824  ;;  %v2875_v1 = vadd.f32 1.0, %v4823_v61 }
 0xabf   :  { %v4827_v4 = vpop.eup %4826  ;;  %v2964_v9 = vadd.f32 1.0, %v4825_v0 }
 0xac0   :  { %v4829_v10 = vpop.eup %4828  ;;  %4838 = vrcp.f32 %v2875_v1  ;;  %v2874_v12 = vadd.f32 1.0, %v4827_v4 }
 0xac1   :  { %4840 = vrcp.f32 %v2964_v9  ;;  %v2963_v14 = vadd.f32 1.0, %v4829_v10 }
 0xac2   :  { %4842 = vrcp.f32 %v2874_v12 }
 0xac3   :  { %4844 = vrcp.f32 %v2963_v14  ;;  %v4831_v15 = vpop.eup %4830 }
 0xac4   :  { %v4833_v16 = vpop.eup %4832 }
 0xac5   :  { %v4835_v18 = vpop.eup %4834 }
 0xac6   :  { %v4837_v19 = vpop.eup %4836  ;;  %v3132_v31 = vadd.f32 1.0, %v4835_v18 }
 0xac7   :  { %v3131_v36 = vadd.f32 1.0, %v4837_v19 }
 0xac8   :  { %4846 = vrcp.f32 %v3132_v31 }
 0xaca   :  { %v4839_v21 = vpop.eup %4838 }
 0xacb   :  { %v4841_v25 = vpop.eup %4840  ;;  %v3140_v30 = vmul.f32 %v4839_v21, %v4831_v15 }
 0xacc   :  { %v4843_v32 = vpop.eup %4842  ;;  %v3138_v2 = vmul.f32 %v4841_v25, %v5561_v27 }
 0xacd   :  { %v4845_v3 = vpop.eup %4844  ;;  %v3139_v35 = vmul.f32 %v4843_v32, %v4833_v16 }
 0xace   :  { %v3137_v37 = vmul.f32 %v4845_v3, %v5564_v28  ;;  %v5619_v38 = vadd.f32 %v3140_v30, %v3138_v2 }
 0xad0   :  { %4848 = vtanh.f32 %v5619_v38  ;;  %v5622_v39 = vadd.f32 %v3139_v35, %v3137_v37 }
 0xad1   :  { %4850 = vrcp.f32 %v3131_v36 }
 0xad2   :  { %4852 = vtanh.f32 %v5622_v39  ;;  %v4847_v44 = vpop.eup %4846 }
 0xada   :  { %v4849_v46 = vpop.eup %4848 }
 0xadb   :  { %v4851_v29 = vpop.eup %4850  ;;  %v5625_v40 = vmul.f32 %v4849_v46, %v4847_v44 }
 0xadc   :  { %v4853_v27 = vpop.eup %4852 }
 0xadd   :  { %v5627_v41 = vmul.f32 %v4853_v27, %v4851_v29  ;;  %4854 = vtanh.f32 %v5625_v40 }
 0xadf   :  { %4414 = vmatprep.mubr.msk.f32.mxu0 %vm419_vm5, %v5627_v41  ;;  %4425 = vmatprep.mubr.msk.f32.mxu1 %vm419_vm5, %v5627_v41  ;;  %4856 = vtanh.f32 %v5627_v41 }
 0xae0   :  { %4415 = vmatmul.mubr.msk.f32.vlgmr.msra.gmra.mrb[24].mxu0 %vm419_vm5, %v5625_v40  ;;  %4426 = vmatmul.mubr.msk.f32.vlgmr.msra.gmra.mrb[22].mxu1 %vm419_vm5, %v5625_v40 }
 0xae1   :  { %4665 = vmatpush3.bf16.msra.mxu0 %v5419_v62  ;;  %4673 = vmatpush3.bf16.msra.mxu1 %v5421_v63  ;;  %v5656_v62 = vld [vmem:[%s5724_s13] ss:$0 sm:$0xff] }
 0xae2   :  { %4436 = vmatprep.mubr.msk.f32.mxu0 %vm419_vm5, %v5627_v41  ;;  %4447 = vmatprep.mubr.msk.f32.mxu1 %vm419_vm5, %v5627_v41 }
 0xae3   :  { %4667 = vmatprep.subr.bf16.mxu0 %v5455_v5  ;;  %4675 = vmatprep.subr.bf16.mxu1 %v5457_v6 }
 0xae5   :  { %4669 = vmatpush3.bf16.msra.mxu0 %v5455_v5  ;;  %4677 = vmatpush3.bf16.msra.mxu1 %v5457_v6 }
 0xae7   :  { %v4855_v28 = vpop.eup %4854 }
 0xae8   :  { %4437 = vmatmul.mubr.msk.f32.vlgmr.msra.gmra.mrb[32].mxu0 %vm419_vm5, %v5625_v40  ;;  %4448 = vmatmul.mubr.msk.f32.vlgmr.msra.gmra.mrb[30].mxu1 %vm419_vm5, %v5625_v40  ;;  %v3557_v63 = vmul.f32 %v5656_v62, %v4855_v28 }
 0xae9   :  { %v4857_v42 = vpop.eup %4856 }
 0xaea   :  { %v3561_v43 = vsel %vm419_vm5, %v3557_v63, 0.0  ;;  %v3556_v5 = vmul.f32 %v5656_v62, %v4857_v42 }
 0xaeb   :  { %3562 = vadd.xlane.f32.xlu1 %v3561_v43 }
 0xaec   :  { %v3558_v6 = vsel %vm419_vm5, %v3556_v5, 0.0 }
 0xaed   :  { %3559 = vadd.xlane.f32.xlu0 %v3558_v6 }
 0xbb3   :  { %v4416_v45 = vpop.f32.mrb[24].mxu0  ;;  %v4427_v47 = vpop.f32.mrb[22].mxu1 }
 0xbb4   :  { %v4684_v56 = vadd.f32 %v4416_v45, %v5478_v7  ;;  %v4692_v48 = vadd.f32 %v4427_v47, %v5483_v8  ;;  %v3219_v57 = vpop.f32.mrb[25].mxu0  ;;  %v3308_v49 = vpop.f32.mrb[23].mxu1 }
 0xbb5   :  { %v4685_v50 = vadd.f32 %v5478_v7, %v3219_v57  ;;  %v4693_v51 = vadd.f32 %v5483_v8, %v3308_v49  ;;  %v3539_v49 = vpop.xlane.xlu1 %3538 }
 0xbb6   :  { %v3824_v52 = vmul.f32 -1.442695, %v4684_v56  ;;  %v3828_v53 = vmul.f32 -1.442695, %v4692_v48 }
 0xbb7   :  { %v3823_v54 = vmul.f32 -1.442695, %v4685_v50  ;;  %v3827_v55 = vmul.f32 -1.442695, %v4693_v51  ;;  %v3526_v50 = vpop.xlane.xlu0 %3525 }
 0xbb8   :  { %4858 = vpow2.f32 %v3824_v52 }
 0xbb9   :  { %4860 = vpow2.f32 %v3828_v53  ;;  %v3536_v51 = vpop.xlane.xlu1 %3535 }
 0xbba   :  { %4862 = vpow2.f32 %v3823_v54  ;;  %v3527_v54 = vstv %s5711_s0  ;;  %s4944_s0 = smov [#allocation3]  }
 0xbbb   :  { %4864 = vpow2.f32 %v3827_v55  ;;  %v4438_v58 = vpop.f32.mrb[32].mxu0  ;;  %v4449_v59 = vpop.f32.mrb[30].mxu1  ;;  %v3541_v55 = vadd.f32 %v3539_v49, %v3527_v54  ;;  %s3653_s23 = sshll.u32 %s4944_s0, 4  ;;  %s3654_s23 = int_to_ptr.vmem [resolvable:$true] %s3653_s23 }
 0xbbc   :  { %v4708_v60 = vadd.f32 %v4449_v59, %v5492_v17  ;;  %v3397_v61 = vpop.f32.mrb[33].mxu0  ;;  %v3476_v0 = vpop.f32.mrb[31].mxu1  ;;  %v4700_v1 = vadd.f32 %v4438_v58, %v5497_v26  ;;  %s4919_s24 = scalar_lea.vmem %s3654_s23, 256  ;;  %p4924_p1 = scmp.lt.s32.totalorder %s3654_s23, %s3654_s23 }
 0xbbd   :  { %v4709_v7 = vadd.f32 %v5492_v17, %v3476_v0  ;;  %v4701_v8 = vadd.f32 %v5497_v26, %v3397_v61  ;;  %v3523_v52 = vpop.xlane.xlu0 %3522  ;;  %v3551_v53 = vpop.xlane.xlu1 %3550  ;;  %v3540_v0 = vadd.f32 %v3536_v51, %v3527_v54  ;;  %p4920_p0 = scmp.ne.s32.totalorder %s3654_s23, %s4919_s24  ;;  %p4925_p2 = scmp.lt.s32.totalorder %s4919_s24, %s4919_s24 }
 0xbbe   :  { %v3834_v4 = vmul.f32 -1.442695, %v4708_v60  ;;  %4866 = vtanh.f32 %v4700_v1  ;;  %v3529_v60 = vadd.f32 %v3527_v54, %v3526_v50  ;;  %v3553_v61 = vadd.f32 %v3551_v53, %v3527_v54 }
 0xbbf   :  { %v3833_v9 = vmul.f32 -1.442695, %v4709_v7  ;;  %4868 = vtanh.f32 %v4701_v8  ;;  %v3528_v8 = vadd.f32 %v3527_v54, %v3523_v52  ;;  %p4926_p3 = por %p4925_p2, %p4924_p1 }
 0xbc0   :  { %4870 = vpow2.f32 %v3834_v4 }
 0xbc1   :  { %4872 = vpow2.f32 %v3833_v9  ;;  %v3548_v58 = vpop.xlane.xlu0 %3547  ;;  %v3563_v59 = vpop.xlane.xlu1 %3562  ;;  %p4927_p4 = pnand %p4926_p3, %p4920_p0 }
 0xbc2   :  { %v4859_v10 = vpop.eup %4858  ;;  %v3565_v1 = vadd.f32 %v3563_v59, %v3527_v54  ;;  %v3552_v4 = vadd.f32 %v3548_v58, %v3527_v54 }
 0xbc3   :  { %v4861_v12 = vpop.eup %4860  ;;  %v3237_v14 = vadd.f32 1.0, %v4859_v10  ;;  %v3578_v10 = vmax.f32 %v3528_v8, %v3540_v0 }
 0xbc4   :  { %v4863_v15 = vpop.eup %4862  ;;  %v3326_v16 = vadd.f32 1.0, %v4861_v12 }
 0xbc5   :  { %v4865_v18 = vpop.eup %4864  ;;  %4874 = vrcp.f32 %v3237_v14  ;;  %v3236_v19 = vadd.f32 1.0, %v4863_v15  ;;  %v3560_v7 = vpop.xlane.xlu0 %3559 }
 0xbc6   :  { %4876 = vrcp.f32 %v3326_v16  ;;  %v3325_v21 = vadd.f32 1.0, %v4865_v18  ;;  %v3564_v12 = vadd.f32 %v3560_v7, %v3527_v54  ;;  %v3580_v18 = vmax.f32 %v3578_v10, %v3552_v4 }
 0xbc7   :  { %4878 = vrcp.f32 %v3236_v19 }
 0xbc8   :  { %4880 = vrcp.f32 %v3325_v21  ;;  %v4867_v17 = vpop.eup %4866 }
 0xbc9   :  { %v4869_v26 = vpop.eup %4868 }
 0xbca   :  { %v4871_v25 = vpop.eup %4870 }
 0xbcb   :  { %v4873_v30 = vpop.eup %4872  ;;  %v3494_v3 = vadd.f32 1.0, %v4871_v25 }
 0xbcc   :  { %v3493_v46 = vadd.f32 1.0, %v4873_v30 }
 0xbcd   :  { %4882 = vrcp.f32 %v3494_v3 }
 0xbcf   :  { %v4875_v31 = vpop.eup %4874 }
 0xbd0   :  { %v4877_v32 = vpop.eup %4876  ;;  %v3502_v2 = vmul.f32 %v4875_v31, %v4867_v17 }
 0xbd1   :  { %v4879_v35 = vpop.eup %4878  ;;  %v3500_v36 = vmul.f32 %v4877_v32, %v5619_v38 }
 0xbd2   :  { %v4881_v37 = vpop.eup %4880  ;;  %v3501_v44 = vmul.f32 %v4879_v35, %v4869_v26  ;;  %v3582_v26 = vmax.f32 %v3580_v18, %v3564_v12 }
 0xbd3   :  { %v3499_v29 = vmul.f32 %v4881_v37, %v5622_v39  ;;  %v3504_v27 = vadd.f32 %v3502_v2, %v3500_v36 }
 0xbd5   :  { %4884 = vtanh.f32 %v3504_v27  ;;  %v3503_v28 = vadd.f32 %v3501_v44, %v3499_v29 }
 0xbd6   :  { %4886 = vrcp.f32 %v3493_v46 }
 0xbd7   :  { %4888 = vtanh.f32 %v3503_v28  ;;  %v4883_v63 = vpop.eup %4882 }
 0xbdf   :  { %v4885_v42 = vpop.eup %4884 }
 0xbe0   :  { %v4887_v43 = vpop.eup %4886  ;;  %v5672_v5 = vmul.f32 %v4885_v42, %v4883_v63 }
 0xbe1   :  { %v4889_v6 = vpop.eup %4888 }
 0xbe2   :  { %4890 = vtanh.f32 %v5672_v5  ;;  %v5675_v38 = vmul.f32 %v4889_v6, %v4887_v43 }
 0xbe4   :  { %4892 = vtanh.f32 %v5675_v38 }
 0xbec   :  { %v4891_v45 = vpop.eup %4890 }
 0xbed   :  { %v3569_v39 = vmul.f32 %v5656_v62, %v4891_v45 }
 0xbee   :  { %v4893_v47 = vpop.eup %4892 }
 0xbef   :  { %v3573_v56 = vsel %vm419_vm5, %v3569_v39, 0.0  ;;  %v3568_v48 = vmul.f32 %v5656_v62, %v4893_v47  ;;  %v3579_v62 = vmax.f32 %v3529_v60, %v3541_v55 }
 0xbf0   :  { %3574 = vadd.xlane.f32.xlu1 %v3573_v56 }
 0xbf1   :  { %v3570_v57 = vsel %vm419_vm5, %v3568_v48, 0.0  ;;  %v3581_v9 = vmax.f32 %v3579_v62, %v3553_v61 }
 0xbf2   :  { %3571 = vadd.xlane.f32.xlu0 %v3570_v57 }
 0xbf3   :  { %v3583_v15 = vmax.f32 %v3581_v9, %v3565_v1 }
 0xc7d   :  { %v3575_v14 = vpop.xlane.xlu1 %3574 }
 0xc7e   :  { %v3577_v16 = vadd.f32 %v3575_v14, %v3527_v54 }
 0xc7f   :  { %v3572_v19 = vpop.xlane.xlu0 %3571 }
 0xc80   :  { %v3585_v21 = vmax.f32 %v3583_v15, %v3577_v16  ;;  %v3576_v17 = vadd.f32 %v3572_v19, %v3527_v54 }
 0xc82   :  { %v3587_v25 = vsub.f32 %v3529_v60, %v3585_v21  ;;  %v3593_v30 = vsub.f32 %v3541_v55, %v3585_v21  ;;  %v3599_v31 = vsub.f32 %v3553_v61, %v3585_v21  ;;  %v3605_v32 = vsub.f32 %v3565_v1, %v3585_v21 }
 0xc83   :  { %v3584_v2 = vmax.f32 %v3582_v26, %v3576_v17  ;;  %v3611_v37 = vsub.f32 %v3577_v16, %v3585_v21 }
 0xc84   :  { %v3590_v3 = vmul.f32 1.442695, %v3587_v25  ;;  %v3596_v35 = vmul.f32 1.442695, %v3593_v30  ;;  %v3602_v36 = vmul.f32 1.442695, %v3599_v31 }
 0xc85   :  { %v3586_v44 = vsub.f32 %v3528_v8, %v3584_v2  ;;  %v3592_v46 = vsub.f32 %v3540_v0, %v3584_v2  ;;  %v3608_v29 = vmul.f32 1.442695, %v3605_v32  ;;  %v3598_v27 = vsub.f32 %v3552_v4, %v3584_v2 }
 0xc86   :  { %4894 = vpow2.f32 %v3590_v3  ;;  %v3604_v42 = vsub.f32 %v3564_v12, %v3584_v2  ;;  %v3614_v43 = vmul.f32 1.442695, %v3611_v37  ;;  %v3610_v45 = vsub.f32 %v3576_v17, %v3584_v2 }
 0xc87   :  { %4896 = vpow2.f32 %v3596_v35  ;;  %v3588_v28 = vmul.f32 1.442695, %v3586_v44  ;;  %v3594_v63 = vmul.f32 1.442695, %v3592_v46  ;;  %v3600_v6 = vmul.f32 1.442695, %v3598_v27 }
 0xc88   :  { %4898 = vpow2.f32 %v3602_v36  ;;  %v3606_v39 = vmul.f32 1.442695, %v3604_v42  ;;  %v3612_v47 = vmul.f32 1.442695, %v3610_v45 }
 0xc89   :  { %4900 = vpow2.f32 %v3608_v29 }
 0xc8a   :  { %4902 = vpow2.f32 %v3588_v28 }
 0xc8b   :  { %4904 = vpow2.f32 %v3594_v63 }
 0xc8c   :  { %4906 = vpow2.f32 %v3614_v43 }
 0xc8d   :  { %4908 = vpow2.f32 %v3600_v6 }
 0xc8e   :  { %4910 = vpow2.f32 %v3606_v39 }
 0xc8f   :  { %4912 = vpow2.f32 %v3612_v47 }
 0xc90   :  { %v4895_v56 = vpop.eup %4894 }
 0xc91   :  { %v4897_v48 = vpop.eup %4896  ;;  %v3625_v50 = vmul.f32 %v4895_v56, %v148_v23 }
 0xc92   :  { %v3617_v57 = vadd.f32 %v4897_v48, %v4895_v56  ;;  %v4899_v49 = vpop.eup %4898  ;;  %v3627_v51 = vmul.f32 %v4897_v48, %v5509_v11 }
 0xc93   :  { %v4901_v52 = vpop.eup %4900  ;;  %v3631_v20 = vmul.f32 %v4899_v49, %v5567_v33 }
 0xc94   :  { %v3619_v53 = vadd.f32 %v4899_v49, %v3617_v57  ;;  %v4903_v54 = vpop.eup %4902  ;;  %v3629_v61 = vadd.f32 %v3627_v51, %v3625_v50  ;;  %v3635_v14 = vmul.f32 %v4901_v52, %v5625_v40 }
 0xc95   :  { %v4905_v55 = vpop.eup %4904  ;;  %v3624_v1 = vmul.f32 %v4903_v54, %v147_v24 }
 0xc96   :  { %v3621_v58 = vadd.f32 %v4901_v52, %v3619_v53  ;;  %v4907_v59 = vpop.eup %4906  ;;  %v3616_v60 = vadd.f32 %v4905_v55, %v4903_v54  ;;  %v3626_v7 = vmul.f32 %v4905_v55, %v5511_v13  ;;  %v3633_v4 = vadd.f32 %v3631_v20, %v3629_v61 }
 0xc97   :  { %v4909_v0 = vpop.eup %4908  ;;  %v3639_v24 = vmul.f32 %v4907_v59, %v5672_v5 }
 0xc98   :  { %v3623_v62 = vadd.f32 %v4907_v59, %v3621_v58  ;;  %v3618_v8 = vadd.f32 %v4909_v0, %v3616_v60  ;;  %v4911_v23 = vpop.eup %4910  ;;  %v3628_v10 = vadd.f32 %v3626_v7, %v3624_v1  ;;  %v3630_v15 = vmul.f32 %v4909_v0, %v5569_v34 }
 0xc99   :  { %v4913_v9 = vpop.eup %4912  ;;  %v3637_v16 = vadd.f32 %v3635_v14, %v3633_v4  ;;  %v3634_v13 = vmul.f32 %v4911_v23, %v5627_v41 }
 0xc9a   :  { %4914 = vrcp.f32 %v3623_v62  ;;  %v3620_v11 = vadd.f32 %v4911_v23, %v3618_v8  ;;  %v3632_v22 = vadd.f32 %v3630_v15, %v3628_v10  ;;  %v3638_v17 = vmul.f32 %v4913_v9, %v5675_v38 }
 0xc9b   :  { %v3641_v18 = vadd.f32 %v3639_v24, %v3637_v16 }
 0xc9c   :  { %v3622_v12 = vadd.f32 %v4913_v9, %v3620_v11  ;;  %v3636_v19 = vadd.f32 %v3634_v13, %v3632_v22 }
 0xc9e   :  { %4916 = vrcp.f32 %v3622_v12  ;;  %v3640_v40 = vadd.f32 %v3638_v17, %v3636_v19 }
 0xca4   :  { %v4915_v33 = vpop.eup %4914 }
 0xca5   :  { %v3645_v21 = vmul.f32 %v4915_v33, %v3641_v18 }
 0xca7   :  { %3647 = vst.msk [vmem:[#allocation3 + $0x8] sm:$0xff] %vm419_vm5, %v3645_v21 }
 0xca8   :  { %v4917_v26 = vpop.eup %4916 }
 0xca9   :  { %v3643_v34 = vmul.f32 %v4917_v26, %v3640_v40 }
 0xcab   :  { %3646 = vst.msk [vmem:[#allocation3] sm:$0xff] %vm419_vm5, %v3643_v34 }
 0xcac   :  { %4930 = shalt.err (!%p4927_p4)
}
 0xcad   :  { %s4931_s5 = scalar_lea.hbm %s5725_s14, 256 }
 0xcae   :  { %p4932_p5 = scmp.ne.s32.totalorder %s5725_s14, %s4931_s5  ;;  %p4935_p6 = scmp.lt.u32.totalorder %s4931_s5, %s5725_s14 }
 0xcb0   :  { %p4937_p7 = pnand %p4935_p6, %p4932_p5 }
 0xcb2   :  { %4940 = shalt.err (!%p4937_p7)
}
 0xcb3   :  { %s4945_s7 = smov 128   ;;  %s4946_s29 = smov 8  }
 0xcb4   :  { %3659 = dma.vmem_to_hbm [thread:$0]  %s3654_s23, 256, %s5725_s14, [#allocation4], %s4945_s7, %s4945_s7, %s4946_s29  }
 0xcb5   :  { %4941 = dma.done.wait [#allocation4], 256  }
 0xcb6   :  { %4942 = vsyncadd [#allocation4], 4294967040 }
 0xcb7   :  { %3663 = vsyncpa [#allocation4], 1 }

</bundles_post_ra>
